<compile_context>
chip_gen: v5e
topology: v5e:2x2
jax: 0.10.0
libtpu: 0.0.40
codegen_flags: <defaults>
</compile_context>

<pallas_src>
import functools
import math

import jax
import jax.numpy as jnp
import numpy as np
from jax import lax
from jax.experimental import pallas as pl
from jax.experimental.pallas import tpu as pltpu

AUTO_TAG = "<<auto>>"

_SMALL_BYPASS_BYTES = 1 << 20          # below this XLA's fused transpose wins
_TILE_LADDER = (2048, 1024, 512, 384, 256, 128, 64, 32, 16, 8)


# ---------------------------------------------------------------------------
# reshape_spec parsing (mirrors norm_reshape_spec / check_reshape_spec logic)
# ---------------------------------------------------------------------------
def _prod(vals):
    return functools.reduce(lambda a, b: a * b, vals, 1)


def _spec_idxs(reshape_spec, num_in_dims):
    """Order of the (non-batch) input dims implied by the spec."""
    if reshape_spec == "flatten":
        return list(range(num_in_dims))
    idxs = []
    for val in reshape_spec:
        if isinstance(val, int):
            idxs.append(val)
        elif isinstance(val, (list, tuple)):
            idxs.extend(val)
        elif isinstance(val, dict):
            idxs.append(int(next(iter(val.keys()))))
        else:
            raise ValueError(f"unsupported reshape_spec entry: {val!r}")
    return idxs


def _spec_out_shape(reshape_spec, batch, in_dims):
    """Final output shape (batch included) implied by the spec."""
    if reshape_spec == "flatten":
        return (batch, int(_prod(in_dims)))
    out = [batch]
    for val in reshape_spec:
        if isinstance(val, int):
            out.append(in_dims[val])
        elif isinstance(val, (list, tuple)):
            out.append(int(_prod(in_dims[v] for v in val)))
        elif isinstance(val, dict):
            key = next(iter(val.keys()))
            in_dim = in_dims[int(key)]
            dims = list(val[key])
            if any(d == AUTO_TAG for d in dims):
                auto_idx = dims.index(AUTO_TAG)
                nonauto = _prod(d for d in dims if d != AUTO_TAG)
                dims[auto_idx] = in_dim // nonauto
            out.extend(int(d) for d in dims)
    return tuple(out)


# ---------------------------------------------------------------------------
# Canonicalisation + tile / budget helpers
# ---------------------------------------------------------------------------
def _collapse_perm(shape, perm):
    """Merge adjacent dims that stay adjacent & in-order under `perm`."""
    groups = []
    for p in perm:
        if groups and p == groups[-1][-1] + 1:
            groups[-1].append(p)
        else:
            groups.append([p])
    in_order = sorted(groups, key=lambda g: g[0])
    collapsed_shape = tuple(int(_prod(shape[d] for d in g)) for g in in_order)
    pos = {tuple(g): i for i, g in enumerate(in_order)}
    reduced_perm = tuple(pos[tuple(g)] for g in groups)
    return collapsed_shape, reduced_perm


def _vmem_budgets():
    """(vmem_limit_bytes, per-block budget) derived from the actual chip."""
    cap = None
    try:
        cap = getattr(pltpu.get_tpu_info(), "vmem_capacity_bytes", None)
    except Exception:
        cap = None
    if not cap:
        cap = 64 * 1024 * 1024                      # conservative default
    vmem_limit = int(min(cap // 2, 64 * 1024 * 1024))
    # in + out, double-buffered = 4 blocks ~= half the limit; the rest is
    # headroom for on-chip relayout temps and extra pipeline buffers.
    return vmem_limit, vmem_limit // 8


def _sublane_min(itemsize):
    # Native sublane tile: 8 for 4-byte, 16 for 2-byte, 32 for 1-byte dtypes.
    return {4: 8, 2: 16, 1: 32}.get(itemsize, 8)


def _pick_tile(dim, cap, multiple):
    """Largest ladder tile <= cap, multiple of `multiple`, dividing `dim`;
    else the full dim (a full-extent block is always block-legal)."""
    for t in _TILE_LADDER:
        if t <= cap and t % multiple == 0 and dim % t == 0:
            return t
    return dim


def _cost(nbytes):
    return pl.CostEstimate(flops=0, transcendentals=0, bytes_accessed=2 * nbytes)


def _input_spec(block_shape, index_map, block_bytes):
    # Near-zero compute per block: small blocks expose DMA issue latency, so
    # request a third buffer when the block is small.
    if block_bytes < 512 * 1024 and hasattr(pl, "Buffered"):
        try:
            return pl.BlockSpec(block_shape, index_map, pipeline_mode=pl.Buffered(3))
        except TypeError:
            pass
    return pl.BlockSpec(block_shape, index_map)


# ---------------------------------------------------------------------------
# Pallas kernels (pure data movement; batch dim squeezed out of the block)
# ---------------------------------------------------------------------------
def _swap_folded_kernel(x_ref, o_ref, *, tm, tn, v):
    # (tm, tn*v) --on-chip--> (tn, tm*v); HBM loads/stores stay lane-dense.
    x = x_ref[...].reshape(tm, tn, v)
    o_ref[...] = jnp.transpose(x, (1, 0, 2)).reshape(tn, tm * v)


def _swap_mid_kernel(x_ref, o_ref):
    # (tm, tn, tv) -> (tn, tm, tv): sublane swap, lane axis untouched.
    o_ref[...] = jnp.transpose(x_ref[...], (1, 0, 2))


def _transpose2d_kernel(x_ref, o_ref):
    # (ta, tb) -> (tb, ta): lane-moving transpose on a 128-aligned tile (XLU).
    o_ref[...] = x_ref[...].T


def _generic_permute_kernel(x_ref, o_ref, *, perm_tail):
    o_ref[...] = jnp.transpose(x_ref[...], perm_tail)


# ---------------------------------------------------------------------------
# Permute paths
# ---------------------------------------------------------------------------
def _swap_mid(xc):
    """Collapsed (P, M, N, V) -> row-major array equivalent to (P, N, M, V)."""
    P, M, N, V = xc.shape
    vmem_limit, budget = _vmem_budgets()
    orig_dtype = xc.dtype

    # Bit-pack sub-32-bit trailing elements into uint32 (pure bitcast): fewer
    # stores through the vst slot (v5e has a single one) and no packed-row
    # relayout for the on-chip swap.
    group = 1
    if xc.dtype.itemsize < 4 and V % (4 // xc.dtype.itemsize) == 0:
        group = 4 // xc.dtype.itemsize
        xc = lax.bitcast_convert_type(
            xc.reshape(P, M, N, V // group, group), jnp.uint32)
        V = V // group

    itemsize = xc.dtype.itemsize
    sub = _sublane_min(itemsize)
    cost = _cost(xc.size * itemsize)
    out = None

    if V < 128:
        # Lane-dense folded path: input viewed (P, M, N*V), output (P, N, M*V).
        lane_need = 128 // math.gcd(V, 128)
        req = (sub * lane_need) // math.gcd(sub, lane_need)       # lcm
        cap = max(int(math.isqrt(max(budget // max(V * itemsize, 1), 1))), 1)
        tm = _pick_tile(M, cap, req)
        tn = _pick_tile(N, cap, req)
        block_bytes = tm * tn * V * itemsize
        if block_bytes <= vmem_limit // 4:
            xv = xc.reshape(P, M, N * V)            # contiguous: metadata only
            out = pl.pallas_call(
                functools.partial(_swap_folded_kernel, tm=tm, tn=tn, v=V),
                out_shape=jax.ShapeDtypeStruct((P, N, M * V), xc.dtype),
                grid=(P, N // tn, M // tm),         # innermost -> dense output writes
                in_specs=[_input_spec((None, tm, tn * V),
                                      lambda p, ni, mi: (p, mi, ni), block_bytes)],
                out_specs=pl.BlockSpec((None, tn, tm * V),
                                       lambda p, ni, mi: (p, ni, mi)),
                compiler_params=pltpu.CompilerParams(
                    dimension_semantics=("parallel",) * 3,
                    vmem_limit_bytes=vmem_limit),
                cost_estimate=cost,
            )(xv)
    else:
        # V already lane-dense; tile it (multiples of 128) so huge merged V
        # stays within the block budget.
        cap_v = max(budget // max(sub * sub * itemsize, 1), 128)
        tv = _pick_tile(V, cap_v, 128) if V % 128 == 0 else V
        cap = max(int(math.isqrt(max(budget // max(tv * itemsize, 1), 1))), 1)
        tm = _pick_tile(M, cap, sub)
        tn = _pick_tile(N, cap, sub)
        block_bytes = tm * tn * tv * itemsize
        if block_bytes <= vmem_limit // 4:
            out = pl.pallas_call(
                _swap_mid_kernel,
                out_shape=jax.ShapeDtypeStruct((P, N, M, V), xc.dtype),
                grid=(P, N // tn, M // tm, V // tv),
                in_specs=[_input_spec((None, tm, tn, tv),
                                      lambda p, ni, mi, vi: (p, mi, ni, vi),
                                      block_bytes)],
                out_specs=pl.BlockSpec((None, tn, tm, tv),
                                       lambda p, ni, mi, vi: (p, ni, mi, vi)),
                compiler_params=pltpu.CompilerParams(
                    dimension_semantics=("parallel",) * 4,
                    vmem_limit_bytes=vmem_limit),
                cost_estimate=cost,
            )(xc)

    if out is None:
        # Safety valve for pathological factorisations that cannot be tiled
        # legally within the VMEM budget.
        out = jnp.transpose(xc, (0, 2, 1, 3))

    if group > 1:
        unpacked = lax.bitcast_convert_type(out, orig_dtype)       # (..., group)
        out = unpacked.reshape(unpacked.shape[:-2]
                               + (unpacked.shape[-2] * unpacked.shape[-1],))
    return out


def _transpose_2d(xc):
    """Collapsed (P, A, B) -> (P, B, A) with 128-aligned, lane-dense tiles."""
    P, A, B = xc.shape
    itemsize = xc.dtype.itemsize
    vmem_limit, budget = _vmem_budgets()
    # Both tile dims sit on the lane axis on one side of the transpose ->
    # both should be multiples of 128 (which also covers the sublane floor).
    cap = max(int(math.isqrt(max(budget // itemsize, 1))), 1)
    ta = _pick_tile(A, cap, 128)
    tb = _pick_tile(B, cap, 128)
    block_bytes = ta * tb * itemsize
    if block_bytes > vmem_limit // 4:
        return jnp.transpose(xc, (0, 2, 1))
    return pl.pallas_call(
        _transpose2d_kernel,
        out_shape=jax.ShapeDtypeStruct((P, B, A), xc.dtype),
        grid=(P, B // tb, A // ta),                 # innermost -> dense output writes
        in_specs=[_input_spec((None, ta, tb),
                              lambda p, bi, ai: (p, ai, bi), block_bytes)],
        out_specs=pl.BlockSpec((None, tb, ta), lambda p, bi, ai: (p, bi, ai)),
        compiler_params=pltpu.CompilerParams(
            dimension_semantics=("parallel",) * 3,
            vmem_limit_bytes=vmem_limit),
        cost_estimate=_cost(xc.size * itemsize),
    )(xc)


def _generic_permute(xc, perm):
    """Rare lane-moving multi-axis permutes: whole-sample on-chip permute."""
    P = xc.shape[0]
    itemsize = xc.dtype.itemsize
    vmem_limit, _ = _vmem_budgets()
    per_sample = int(_prod(xc.shape[1:])) * itemsize
    # in + out, double-buffered, plus headroom for the on-chip relayout temp.
    if 6 * per_sample > vmem_limit:
        # TODO(synk): decompose large lane-moving permutes into chained
        # 128x128-tiled 2D transposes instead of deferring to XLA.
        return jnp.transpose(xc, perm)
    permuted_shape = tuple(xc.shape[p] for p in perm)
    perm_tail = tuple(p - 1 for p in perm[1:])
    n_tail = xc.ndim - 1
    return pl.pallas_call(
        functools.partial(_generic_permute_kernel, perm_tail=perm_tail),
        out_shape=jax.ShapeDtypeStruct(permuted_shape, xc.dtype),
        grid=(P,),
        in_specs=[pl.BlockSpec((None,) + tuple(xc.shape[1:]),
                               lambda b: (b,) + (0,) * n_tail)],
        out_specs=pl.BlockSpec((None,) + tuple(permuted_shape[1:]),
                               lambda b: (b,) + (0,) * n_tail),
        compiler_params=pltpu.CompilerParams(
            dimension_semantics=("parallel",),
            vmem_limit_bytes=vmem_limit),
        cost_estimate=_cost(xc.size * itemsize),
    )(xc)


def _pallas_permute(x, perm):
    """Physically permute `x` (perm[0] == 0, i.e. batch stays in front)."""
    # Small-tensor bypass: launch + per-grid-step overhead dominates.
    if x.size * x.dtype.itemsize < _SMALL_BYPASS_BYTES:
        return jnp.transpose(x, perm)

    cshape, rperm = _collapse_perm(x.shape, perm)
    xc = x.reshape(cshape)                          # contiguous: metadata only
    if rperm == tuple(range(len(rperm))):
        return xc                                   # identity (handled by caller)
    if rperm == (0, 2, 1, 3):
        return _swap_mid(xc)                        # lane dim stays last
    if rperm == (0, 2, 1):
        return _transpose_2d(xc)                    # lane dim moves: 2D transpose
    return _generic_permute(xc, rperm)


# ---------------------------------------------------------------------------
# Public entry point: equivalent of narchi Reshape(reshape_spec).forward(x)
# ---------------------------------------------------------------------------
def pallas_reshape(x, reshape_spec):
    num_in_dims = x.ndim - 1
    idxs = _spec_idxs(reshape_spec, num_in_dims)
    if len(idxs) != num_in_dims:
        raise RuntimeError(
            f"Reshape got a tensor with {x.ndim} dimensions but expected {len(idxs) + 1}."
        )
    out_shape = _spec_out_shape(reshape_spec, x.shape[0], x.shape[1:])
    perm = (0,) + tuple(i + 1 for i in idxs)

    # Identity permutation ("flatten", pure splits/merges): metadata only.
    if perm == tuple(range(x.ndim)):
        return x.reshape(out_shape)

    permuted = _pallas_permute(x, perm)
    # Final contiguous reshape of the already-permuted result: metadata glue.
    return permuted.reshape(out_shape)


# ---------------------------------------------------------------------------
# Pure-JAX reference (mirrors the PyTorch forward exactly)
# ---------------------------------------------------------------------------
def reference_reshape(x, reshape_spec):
    num_in_dims = x.ndim - 1
    idxs = _spec_idxs(reshape_spec, num_in_dims)
    perm = (0,) + tuple(i + 1 for i in idxs)
    y = jnp.transpose(x, perm) if list(idxs) != list(range(num_in_dims)) else x
    return y.reshape(_spec_out_shape(reshape_spec, x.shape[0], x.shape[1:]))


# ---------------------------------------------------------------------------
if __name__ == "__main__":
    key = jax.random.PRNGKey(0)

    def check(x, spec):
        out = jax.block_until_ready(pallas_reshape(x, spec))
        ref = reference_reshape(x, spec)
        assert out.shape == ref.shape, (out.shape, ref.shape)
        np.testing.assert_array_equal(
            np.asarray(out.astype(jnp.float32)), np.asarray(ref.astype(jnp.float32)))

    # Small NCHW input (module's typical scale): parsing, identity reshapes and
    # the small-tensor XLA bypass.
    x_small = jax.random.normal(key, (2, 4, 16, 16), dtype=jnp.float32)
    for spec in ["flatten",                       # identity: metadata only
                 [1, [0, 2]],                     # permute + merge (bypass: tiny)
                 [{"0": [2, AUTO_TAG]}, 1, 2]]:   # split with auto dim
        check(x_small, spec)

    keys = jax.random.split(key, 4)
    # Lane-dense folded swap path (trailing run V = 16 < 128).
    check(jax.random.normal(keys[0], (4, 32, 64, 16), dtype=jnp.float32), [1, [0, 2]])
    # 4-D tiled swap path (V = 128, already lane-dense).
    check(jax.random.normal(keys[1], (4, 16, 64, 128), dtype=jnp.float32), [1, [0, 2]])
    # bf16 folded swap path (lane pairs bit-packed to uint32).
    check(jax.random.normal(keys[2], (8, 32, 64, 32), dtype=jnp.bfloat16), [1, [0, 2]])
    # Batched 128-aligned 2D transpose (lane dim moves).
    check(jax.random.normal(keys[3], (4, 8, 128, 128), dtype=jnp.float32), [2, [0, 1]])
    # Generic lane-moving permute fallback (whole-sample, VMEM-fit checked).
    check(jax.random.normal(keys[0], (4, 16, 64, 128), dtype=jnp.float32), [2, 1, 0])

    print("KERNEL_OK")
</pallas_src>

<mosaic_0001>
module attributes {stable_mosaic.version = 11 : i64} {
  func.func @_swap_mid_kernel(%arg0: i32, %arg1: i32, %arg2: i32, %arg3: i32, %arg4: memref<1x16x64x128xf32, #tpu.memory_space<vmem>>, %arg5: memref<1x64x16x128xf32, #tpu.memory_space<vmem>>) attributes {dimension_semantics = [#tpu.dimension_semantics<parallel>, #tpu.dimension_semantics<parallel>, #tpu.dimension_semantics<parallel>, #tpu.dimension_semantics<parallel>], iteration_bounds = array<i64: 4, 1, 1, 1>, scalar_prefetch = 0 : i64, scratch_operands = 0 : i64, tpu.core_type = #tpu.core_type<tc>, window_params = [{transform_indices = @transform_0, window_bounds = array<i64: 1, 16, 64, 128>}, {transform_indices = @transform_1, window_bounds = array<i64: 1, 64, 16, 128>}]} {
    %c0 = arith.constant 0 : index
    %c0_0 = arith.constant 0 : index
    %c0_1 = arith.constant 0 : index
    %c0_2 = arith.constant 0 : index
    %0 = vector.load %arg4[%c0, %c0_0, %c0_1, %c0_2] : memref<1x16x64x128xf32, #tpu.memory_space<vmem>>, vector<1x16x64x128xf32>
    %1 = vector.shape_cast %0 : vector<1x16x64x128xf32> to vector<16x64x128xf32>
    %2 = tpu.transpose %1, [1, 0, 2] : vector<16x64x128xf32> -> vector<64x16x128xf32>
    %c0_3 = arith.constant 0 : index
    %c0_4 = arith.constant 0 : index
    %c0_5 = arith.constant 0 : index
    %c0_6 = arith.constant 0 : index
    %3 = vector.load %arg5[%c0_3, %c0_4, %c0_5, %c0_6] : memref<1x64x16x128xf32, #tpu.memory_space<vmem>>, vector<1x64x16x128xf32>
    %4 = vector.shape_cast %3 : vector<1x64x16x128xf32> to vector<64x16x128xf32>
    %5 = vector.shape_cast %2 : vector<64x16x128xf32> to vector<1x64x16x128xf32>
    tpu.vector_store %arg5[%c0_3, %c0_4, %c0_5, %c0_6], %5 {strides = array<i32>} : memref<1x64x16x128xf32, #tpu.memory_space<vmem>>, vector<1x64x16x128xf32>,
    return
  }
  func.func @transform_0(%arg0: i32, %arg1: i32, %arg2: i32, %arg3: i32) -> (i32, i32, i32, i32) {
    %c0_i32 = arith.constant 0 : i32
    return %arg0, %arg2, %arg1, %arg3 : i32, i32, i32, i32
  }
  func.func @transform_1(%arg0: i32, %arg1: i32, %arg2: i32, %arg3: i32) -> (i32, i32, i32, i32) {
    %c0_i32 = arith.constant 0 : i32
    return %arg0, %arg1, %arg2, %arg3 : i32, i32, i32, i32
  }
}

</mosaic_0001>

<bundles_post_ra>
// kernel: tpu_custom_call.1
= control target key start
LH: loop header
LB: loop body
LE: loop exit
PB: predicated region body
PF: predicated region fallthrough
CT: control target
= control target key end

     0   :  { %6 = vsyncpa [#allocation3], 0  ;;  %s4237_s0 = inlined_call_operand.hbm [shape: f32[4,16,64,128], index: 0, kind: input, shape index: {}]   ;;  %s4238_s1 = inlined_call_operand.hbm [shape: f32[4,64,16,128], index: 1, kind: output, shape index: {}]  }
   0x1   :  { %8 = vsyncpa [#allocation3 + $0x1], 0 }
   0x2   :  { %9 = vsyncpa [#allocation4], 0 }
   0x3   :  { %11 = vsyncpa [#allocation4 + $0x1], 0  ;;  %s2570_s6 = smov 0   ;;  %s2572_s7 = smov 0  }
   0x4   :  { %s2574_s8 = smov 0   ;;  %s2576_s9 = smov 0  }
   0x5   :  { %s2578_s10 = smov 0   ;;  %s2580_s11 = smov 0  }
   0x6 LB: > { %s2355_s12 = sadd.s32 4294967295, %s2552_s11   ;;  %s2356_s13 = sadd.s32 4294967294, %s2552_s11   ;;  %s2552_s11 = sphi %s2580_s11, %s17_s11   ;;  %s2548_s10 = sphi %s2578_s10, %s4247_s10   ;;  %s2544_s9 = sphi %s2576_s9, %s4246_s9   ;;  %s2540_s8 = sphi %s2574_s8, %s4245_s8   ;;  %s2536_s7 = sphi %s2572_s7, %s4244_s7   ;;  %s2532_s6 = sphi %s2570_s6, %s4243_s6  }
   0x7   : > { %s43_s14 = sadd.s32 1, %s2548_s10  ;;  %s56_s15 = sadd.s32 1, %s2540_s8 }
   0x8   : > { %p45_p0 = scmp.ge.s32.totalorder %s43_s14, 4  ;;  %p63_p1 = scmp.ne.s32.totalorder %s2540_s8, %s2536_s7 }
   0x9   : > { %p64_p2 = scmp.eq.s32.totalorder %s2552_s11, 0  ;;  %p69_p3 = scmp.ne.s32.totalorder %s2536_s7, %s2532_s6 }
   0xa   : > { %s4249_s14 = smov (%p45_p0, %s43_s14), 0  ;;  %p70_p5 = scmp.eq.s32.totalorder %s2355_s12, 0 }
   0xb   : > { %p2611_p4 = por %p64_p2, %p63_p1  ;;  %s47_s17 = ssub.s32 %s2548_s10, %s4249_s14 }
   0xc   : > { %p99_p6 = scmp.eq.s32.totalorder %s2355_s12, 3  ;;  %p54_p7 = scmp.eq.s32.totalorder %s47_s17, 0 }
   0xd   : > { %p2617_p8 = por %p70_p5, %p69_p3  ;;  %p105_p10 = scmp.eq.s32.totalorder %s2356_s13, 3 }
   0xe   : > { %p2621_p9 = por %p99_p6, %p63_p1  ;;  %p2384_p12 = scmp.lt.s32.totalorder %s2552_s11, 4 }
   0xf   : > { %s2626_s20 = scalar_select %p54_p7, %s2540_s8, %s56_s15  }
  0x10   : > { %p2628_p11 = por %p105_p10, %p69_p3  ;;  %s125_s22 = sand.u32 1, %s2540_s8  }
  0x11   : > { %s2359_s23 = sshll.u32 %s125_s22, 10  ;;  %s2370_s24 = sshll.u32 %s2548_s10, 10 }
  0x12   : > { %s140_s27 = scalar_lea.hbm %s4237_s0, %s2370_s24  ;;  %s129_s28 = scalar_lea.vmem [#allocation2], %s2359_s23 }
  0x13   : > { %s143_s29 = sshll.u32 %s129_s28, 4  ;;  %s141_s30 = sshll.u32 %s140_s27, 4  ;;  %s144_s29 = int_to_ptr.vmem [resolvable:$true] %s143_s29  ;;  %s142_s30 = int_to_ptr.hbm [resolvable:$true] %s141_s30 }
  0x14   : > { %p2377_p13 = pnand %p2384_p12, %p2611_p4  ;;  %p2362_p0 = scmp.ge.s32.totalorder %s2552_s11, 1 }
  0x15   : > { %s126_s2 = scalar_lea.sflag [#allocation3], %s125_s22  ;;  %s2554_s3 = smov 128  }
  0x16   : > { %s2555_s4 = smov 8   ;;  %p151_p1 = scmp.lt.s32.totalorder %s2552_s11, 5 }
  0x17   : > { %2379 = dma.hbm_to_vmem [thread:$0]  (!%p2377_p13), %s142_s30, 16384, %s144_s29, %s126_s2, %s2554_s3, %s2554_s3, %s2555_s4  }
  0x18   : > { %p152_p2 = pnand %p2362_p0, %p151_p1 }
  0x19   : > { %s2643_s5 = sand.u32 (!%p152_p2), 1, %s2536_s7  }
  0x1a   : > { %155 = sbr.rel (%p152_p2) target bundleno = 302 (0x12e), region = 24  ;;  %s2363_s12 = sshll.u32 (!%p152_p2), %s2643_s5, 10 }
  0x1b   : > { %s158_s13 = scalar_lea.sflag (!%p152_p2), [#allocation3], %s2643_s5  ;;  %s2649_s15 = scalar_lea.vmem (!%p152_p2), [#allocation2], %s2363_s12 }
  0x1f   : > { %2523 = dma.done.wait (%p2617_p8), %s158_s13, 16384  }
  0x20   : > { %2525 = vsyncadd (%p2617_p8), %s158_s13, 4294950912  ;;  %v2556_v0 = vmov 1983009808   ;;  %v2557_v2 = vmov 1934713408   ;;  %v2656_v4 = vld [vmem:[%s2649_s15] sm:$0xff] }
  0x21   : > { %v319_v1 = vunpack.c.l.s4 %v2556_v0  ;;  %v367_v3 = vunpack.c.l.s4 %v2557_v2  ;;  %v2659_v5 = vld [vmem:[%s2649_s15 + $0x40] sm:$0xff]  ;;  %vm314_vm0 = vcmask 1047556   ;;  %v316_v12 = vrot.slane %v2656_v4, 4  ;;  %s2761_s16 = scalar_lea.vmem [#allocation5], %s2363_s12  ;;  %s2371_s17 = sshll.u32 %s2544_s9, 10 }
  0x22   : > { %v2662_v6 = vld [vmem:[%s2649_s15 + $0x80] sm:$0xff]  ;;  %v328_v13 = vrot.slane %v2659_v5, 4  ;;  %s2252_s22 = scalar_lea.hbm %s4238_s1, %s2371_s17  ;;  %s2253_s23 = sshll.u32 %s2761_s16, 4  ;;  %s2254_s23 = int_to_ptr.vmem [resolvable:$true] %s2253_s23 }
  0x23   : > { %v2664_v7 = vunpack.c.0.s8 %v319_v1  ;;  %v2667_v8 = vld [vmem:[%s2649_s15 + $0xc0] sm:$0xff]  ;;  %v313_v11 = vrot.slane %v2662_v6, 4  ;;  %v2687_v19 = vunpack.c.0.s8 %v367_v3  ;;  %s2255_s24 = sshll.u32 %s2252_s22, 4  ;;  %s2235_s25 = scalar_lea.sflag [#allocation4], %s2643_s5  ;;  %s2256_s24 = int_to_ptr.hbm [resolvable:$true] %s2255_s24 }
  0x24   : > { %v2670_v9 = vld [vmem:[%s2649_s15 + $0x100] sm:$0xff]  ;;  %v326_v16 = vrot.slane %v2667_v8, 4  ;;  %s2484_s26 = sshra.s32 %s2256_s24, 4  ;;  %s2490_s30 = scalar_lea.hbm %s4238_s1, 4096  ;;  %s2485_s26 = int_to_ptr.hbm [resolvable:$true] %s2484_s26 }
  0x25   : > { %v2673_v10 = vld [vmem:[%s2649_s15 + $0x140] sm:$0xff]  ;;  %v340_v17 = vrot.slane %v2670_v9, 4  ;;  %v315_v21 = vsel %vm314_vm0, %v313_v11, %v2656_v4  ;;  %v329_v4 = vsel %vm314_vm0, %v2667_v8, %v328_v13  ;;  %s2486_s27 = scalar_lea.hbm %s2485_s26, 1024  ;;  %p2491_p6 = scmp.lt.s32.totalorder %s2485_s26, %s4238_s1 }
  0x26   : > { %v2679_v14 = vld [vmem:[%s2649_s15 + $0x180] sm:$0xff]  ;;  %v352_v18 = vrot.slane %v2673_v10, 4  ;;  %v321_v28 = vperm.slane %v315_v21, %v2664_v7  ;;  %v327_v29 = vsel %vm314_vm0, %v326_v16, %v2659_v5  ;;  %p2487_p3 = scmp.ne.s32.totalorder %s2485_s26, %s2486_s27  ;;  %p2492_p7 = scmp.lt.s32.totalorder %s2490_s30, %s2486_s27 }
  0x27   : > { %v2682_v15 = vld [vmem:[%s2649_s15 + $0x1c0] sm:$0xff]  ;;  %v338_v22 = vrot.slane %v2679_v14, 4  ;;  %v333_v33 = vperm.slane %v327_v29, %v2664_v7 }
  0x28   : > { %v2690_v20 = vld [vmem:[%s2649_s15 + $0x200] sm:$0xff]  ;;  %v350_v23 = vrot.slane %v2682_v15, 4  ;;  %v364_v55 = vrot.slane %v321_v28, 4  ;;  %v353_v13 = vsel %vm314_vm0, %v2682_v15, %v352_v18  ;;  %p2488_p4 = pnand %p2487_p3, %p2621_p9  ;;  %p2493_p8 = por %p2492_p7, %p2491_p6 }
  0x29   : > { %v2697_v24 = vld [vmem:[%s2649_s15 + $0x240] sm:$0xff]  ;;  %v428_v27 = vrot.slane %v2690_v20, 4  ;;  %v339_v34 = vsel %vm314_vm0, %v338_v22, %v2670_v9  ;;  %v362_v44 = vrot.slane %v333_v33, 4  ;;  %v361_v9 = vperm.slane %v353_v13, %v2664_v7  ;;  %v2881_v13 = vld [vmem:[%s2649_s15 + $0x288] sm:$0xff] }
  0x2a   : > { %v2700_v25 = vld [vmem:[%s2649_s15 + $0x280] sm:$0xff]  ;;  %v351_v35 = vsel %vm314_vm0, %v350_v23, %v2673_v10  ;;  %v440_v39 = vrot.slane %v2697_v24, 4  ;;  %v345_v40 = vperm.slane %v339_v34, %v2664_v7  ;;  %v365_v63 = vsel %vm314_vm0, %v333_v33, %v364_v55  ;;  %p2489_p5 = pneg %p2488_p4 }
  0x2b   : > { %v2703_v26 = vld [vmem:[%s2649_s15 + $0x2c0] sm:$0xff]  ;;  %v426_v31 = vrot.slane %v2700_v25, 4  ;;  %v357_v41 = vperm.slane %v351_v35, %v2664_v7  ;;  %v363_v52 = vsel %vm314_vm0, %v362_v44, %v321_v28  ;;  %v373_v2 = vperm.slane %v365_v63, %v2687_v19 }
  0x2c   : > { %v2710_v30 = vld [vmem:[%s2649_s15 + $0x380] sm:$0xff]  ;;  %v438_v32 = vrot.slane %v2703_v26, 4  ;;  %v369_v56 = vperm.slane %v363_v52, %v2687_v19  ;;  %v388_v3 = vrot.slane %v345_v40, 4  ;;  %v441_v10 = vsel %vm314_vm0, %v2703_v26, %v440_v39  ;;  %p2494_p10 = pnand %p2493_p8, %p2489_p5 }
  0x2d   : > { %v2720_v36 = vld [vmem:[%s2649_s15 + $0x300] sm:$0xff]  ;;  %v427_v42 = vsel %vm314_vm0, %v426_v31, %v2690_v20  ;;  %v450_v47 = vrot.slane %v2710_v30, 4  ;;  %v386_v48 = vrot.slane %v357_v41, 4  ;;  %v416_v31 = vrot.slane %v373_v2, 4 }
  0x2e   : > { %v2723_v37 = vld [vmem:[%s2649_s15 + $0x340] sm:$0xff]  ;;  %v439_v43 = vsel %vm314_vm0, %v438_v32, %v2697_v24  ;;  %v433_v45 = vperm.slane %v427_v42, %v2664_v7  ;;  %v452_v49 = vrot.slane %v2720_v36, 4  ;;  %v412_v1 = vrot.slane %v369_v56, 4 }
  0x2f   : > { %v2726_v38 = vld [vmem:[%s2649_s15 + $0x3c0] sm:$0xff]  ;;  %v445_v46 = vperm.slane %v439_v43, %v2664_v7  ;;  %v464_v51 = vrot.slane %v2723_v37, 4  ;;  %v451_v53 = vsel %vm314_vm0, %v450_v47, %v2720_v36  ;;  %v387_v57 = vsel %vm314_vm0, %v386_v48, %v345_v40 }
  0x30   : > { %v462_v50 = vrot.slane %v2726_v38, 4  ;;  %v457_v58 = vperm.slane %v451_v53, %v2664_v7  ;;  %v393_v60 = vperm.slane %v387_v57, %v2687_v19  ;;  %v476_v21 = vrot.slane %v433_v45, 4 }
  0x31   : > { %v474_v54 = vrot.slane %v445_v46, 4  ;;  %v389_v29 = vsel %vm314_vm0, %v357_v41, %v388_v3  ;;  %v317_v43 = vsel %vm314_vm0, %v2662_v6, %v316_v12  ;;  %v337_v53 = vperm.slane %v329_v4, %v2664_v7  ;;  %v2865_v4 = vld [vmem:[%s2649_s15 + $0x188] sm:$0xff] }
  0x32   : > { %v463_v59 = vsel %vm314_vm0, %v462_v50, %v2723_v37  ;;  %v410_v11 = vrot.slane %v393_v60, 4  ;;  %v500_v22 = vrot.slane %v457_v58, 4  ;;  %v413_v23 = vsel %vm314_vm0, %v393_v60, %v412_v1 }
  0x33   : > { %v469_v61 = vperm.slane %v463_v59, %v2664_v7  ;;  %v475_v62 = vsel %vm314_vm0, %v474_v54, %v433_v45  ;;  %2108 = vst [vmem:[%s2761_s16 + $0x10] sm:$0xff] %v413_v23  ;;  %v397_v34 = vperm.slane %v389_v29, %v2687_v19  ;;  %v477_v35 = vsel %vm314_vm0, %v445_v46, %v476_v21  ;;  %v2836_v21 = vld [vmem:[%s2649_s15 + $0x88] sm:$0xff] }
  0x34   : > { %v481_v0 = vperm.slane %v475_v62, %v2687_v19  ;;  %v411_v32 = vsel %vm314_vm0, %v410_v11, %v369_v56  ;;  %v485_v41 = vperm.slane %v477_v35, %v2687_v19  ;;  %v325_v46 = vperm.slane %v317_v43, %v2664_v7 }
  0x35   : > { %v498_v16 = vrot.slane %v469_v61, 4  ;;  %2106 = vst [vmem:[%s2761_s16] sm:$0xff] %v411_v32  ;;  %v501_v42 = vsel %vm314_vm0, %v469_v61, %v500_v22  ;;  %v414_v44 = vrot.slane %v397_v34, 4  ;;  %v417_v47 = vsel %vm314_vm0, %v397_v34, %v416_v31  ;;  %v2844_v31 = vld [vmem:[%s2649_s15 + $0x8] sm:$0xff] }
  0x36   : > { %v524_v28 = vrot.slane %v481_v0, 4  ;;  %v509_v45 = vperm.slane %v501_v42, %v2687_v19  ;;  %2112 = vst [vmem:[%s2761_s16 + $0x30] sm:$0xff] %v417_v47  ;;  %v528_v52 = vrot.slane %v485_v41, 4  ;;  %v341_v54 = vsel %vm314_vm0, %v2679_v14, %v340_v17 }
  0x37   : > { %v499_v33 = vsel %vm314_vm0, %v498_v16, %v457_v58  ;;  %v415_v6 = vsel %vm314_vm0, %v414_v44, %v373_v2  ;;  %v349_v8 = vperm.slane %v341_v54, %v2664_v7  ;;  %v374_v57 = vrot.slane %v337_v53, 4 }
  0x38   : > { %v505_v40 = vperm.slane %v499_v33, %v2687_v19  ;;  %v526_v12 = vrot.slane %v509_v45, 4  ;;  %2110 = vst [vmem:[%s2761_s16 + $0x20] sm:$0xff] %v415_v6  ;;  %v529_v5 = vsel %vm314_vm0, %v509_v45, %v528_v52  ;;  %v429_v14 = vsel %vm314_vm0, %v2700_v25, %v428_v27  ;;  %v2856_v45 = vld [vmem:[%s2649_s15 + $0x108] sm:$0xff] }
  0x39   : > { %v437_v17 = vperm.slane %v429_v14, %v2664_v7  ;;  %v453_v15 = vsel %vm314_vm0, %v2710_v30, %v452_v49  ;;  %v465_v18 = vsel %vm314_vm0, %v2726_v38, %v464_v51  ;;  %2113 = vst [vmem:[%s2761_s16 + $0x38] sm:$0xff] %v529_v5  ;;  %v375_v20 = vsel %vm314_vm0, %v374_v57, %v325_v46  ;;  %v2862_v52 = vld [vmem:[%s2649_s15 + $0x148] sm:$0xff] }
  0x3a   : > { %v522_v48 = vrot.slane %v505_v40, 4  ;;  %v525_v50 = vsel %vm314_vm0, %v505_v40, %v524_v28  ;;  %v527_v56 = vsel %vm314_vm0, %v526_v12, %v485_v41  ;;  %v398_v25 = vrot.slane %v361_v9, 4  ;;  %v2849_v40 = vld [vmem:[%s2649_s15 + $0x48] sm:$0xff] }
  0x3b   : > { %2109 = vst [vmem:[%s2761_s16 + $0x18] sm:$0xff] %v525_v50  ;;  %v449_v27 = vperm.slane %v441_v10, %v2664_v7  ;;  %v461_v24 = vperm.slane %v453_v15, %v2664_v7  ;;  %v381_v26 = vperm.slane %v375_v20, %v2687_v19  ;;  %v473_v36 = vperm.slane %v465_v18, %v2664_v7  ;;  %v2852_v41 = vld [vmem:[%s2649_s15 + $0xc8] sm:$0xff] }
  0x3c   : > { %v523_v55 = vsel %vm314_vm0, %v522_v48, %v481_v0  ;;  %2111 = vst [vmem:[%s2761_s16 + $0x28] sm:$0xff] %v527_v56  ;;  %v376_v39 = vrot.slane %v325_v46, 4  ;;  %v400_v58 = vrot.slane %v349_v8, 4  ;;  %v399_v30 = vsel %vm314_vm0, %v398_v25, %v349_v8  ;;  %v2868_v6 = vld [vmem:[%s2649_s15 + $0x1c8] sm:$0xff] }
  0x3d   : > { %2107 = vst [vmem:[%s2761_s16 + $0x8] sm:$0xff] %v523_v55  ;;  %v486_v37 = vrot.slane %v449_v27, 4  ;;  %v488_v49 = vrot.slane %v437_v17, 4  ;;  %v512_v38 = vrot.slane %v461_v24, 4  ;;  %v405_v51 = vperm.slane %v399_v30, %v2687_v19  ;;  %v2878_v8 = vld [vmem:[%s2649_s15 + $0x208] sm:$0xff] }
  0x3e   : > { %v510_v59 = vrot.slane %v473_v36, 4  ;;  %v420_v60 = vrot.slane %v381_v26, 4  ;;  %v377_v61 = vsel %vm314_vm0, %v337_v53, %v376_v39  ;;  %v401_v0 = vsel %vm314_vm0, %v361_v9, %v400_v58  ;;  %v2884_v56 = vld [vmem:[%s2649_s15 + $0x2c8] sm:$0xff] }
  0x3f   : > { %v487_v62 = vsel %vm314_vm0, %v486_v37, %v437_v17  ;;  %v385_v63 = vperm.slane %v377_v61, %v2687_v19  ;;  %v489_v1 = vsel %vm314_vm0, %v449_v27, %v488_v49  ;;  %v418_v2 = vrot.slane %v405_v51, 4  ;;  %v2892_v10 = vld [vmem:[%s2649_s15 + $0x248] sm:$0xff] }
  0x40   : > { %v493_v3 = vperm.slane %v487_v62, %v2687_v19  ;;  %v511_v11 = vsel %vm314_vm0, %v510_v59, %v461_v24  ;;  %v421_v16 = vsel %vm314_vm0, %v405_v51, %v420_v60  ;;  %v409_v23 = vperm.slane %v401_v0, %v2687_v19  ;;  %v2903_v24 = vld [vmem:[%s2649_s15 + $0x388] sm:$0xff] }
  0x41   : > { %v517_v22 = vperm.slane %v511_v11, %v2687_v19  ;;  %2116 = vst [vmem:[%s2761_s16 + $0x50] sm:$0xff] %v421_v16  ;;  %v497_v28 = vperm.slane %v489_v1, %v2687_v19  ;;  %v513_v29 = vsel %vm314_vm0, %v473_v36, %v512_v38  ;;  %v419_v32 = vsel %vm314_vm0, %v418_v2, %v381_v26  ;;  %v2915_v49 = vld [vmem:[%s2649_s15 + $0x308] sm:$0xff] }
  0x42   : > { %v532_v33 = vrot.slane %v493_v3, 4  ;;  %v521_v34 = vperm.slane %v513_v29, %v2687_v19  ;;  %v424_v35 = vrot.slane %v385_v63, 4  ;;  %2114 = vst [vmem:[%s2761_s16 + $0x40] sm:$0xff] %v419_v32  ;;  %v422_v43 = vrot.slane %v409_v23, 4  ;;  %v2918_v38 = vld [vmem:[%s2649_s15 + $0x348] sm:$0xff] }
  0x43   : > { %v530_v42 = vrot.slane %v517_v22, 4  ;;  %v536_v44 = vrot.slane %v497_v28, 4  ;;  %v538_v47 = vrot.slane %v2836_v21, 4  ;;  %v540_v12 = vrot.slane %v2844_v31, 4  ;;  %v2921_v51 = vld [vmem:[%s2649_s15 + $0x3c8] sm:$0xff] }
  0x44   : > { %v533_v46 = vsel %vm314_vm0, %v517_v22, %v532_v33  ;;  %v534_v48 = vrot.slane %v521_v34, 4  ;;  %v425_v50 = vsel %vm314_vm0, %v409_v23, %v424_v35  ;;  %v423_v54 = vsel %vm314_vm0, %v422_v43, %v385_v63 }
  0x45   : > { %v531_v53 = vsel %vm314_vm0, %v530_v42, %v493_v3  ;;  %2117 = vst [vmem:[%s2761_s16 + $0x58] sm:$0xff] %v533_v46  ;;  %v537_v55 = vsel %vm314_vm0, %v521_v34, %v536_v44  ;;  %v539_v5 = vsel %vm314_vm0, %v538_v47, %v2844_v31  ;;  %v550_v14 = vrot.slane %v2852_v41, 4 }
  0x46   : > { %2115 = vst [vmem:[%s2761_s16 + $0x48] sm:$0xff] %v531_v53  ;;  %v535_v9 = vsel %vm314_vm0, %v534_v48, %v497_v28  ;;  %v545_v57 = vperm.slane %v539_v5, %v2664_v7  ;;  %v552_v17 = vrot.slane %v2849_v40, 4  ;;  %v562_v15 = vrot.slane %v2865_v4, 4 }
  0x47   : > { %2118 = vst [vmem:[%s2761_s16 + $0x60] sm:$0xff] %v423_v54  ;;  %v564_v18 = vrot.slane %v2856_v45, 4  ;;  %v574_v20 = vrot.slane %v2868_v6, 4  ;;  %v576_v25 = vrot.slane %v2862_v52, 4  ;;  %v551_v27 = vsel %vm314_vm0, %v550_v14, %v2849_v40 }
  0x48   : > { %2119 = vst [vmem:[%s2761_s16 + $0x68] sm:$0xff] %v535_v9  ;;  %v650_v26 = vrot.slane %v2881_v13, 4  ;;  %v652_v36 = vrot.slane %v2878_v8, 4  ;;  %v662_v39 = vrot.slane %v2884_v56, 4  ;;  %v557_v58 = vperm.slane %v551_v27, %v2664_v7 }
  0x49   : > { %2120 = vst [vmem:[%s2761_s16 + $0x70] sm:$0xff] %v425_v50  ;;  %v563_v30 = vsel %vm314_vm0, %v562_v15, %v2856_v45  ;;  %v575_v37 = vsel %vm314_vm0, %v574_v20, %v2862_v52  ;;  %v664_v59 = vrot.slane %v2892_v10, 4  ;;  %v674_v3 = vrot.slane %v2903_v24, 4 }
  0x4a   : > { %2121 = vst [vmem:[%s2761_s16 + $0x78] sm:$0xff] %v537_v55  ;;  %v569_v60 = vperm.slane %v563_v30, %v2664_v7  ;;  %v581_v61 = vperm.slane %v575_v37, %v2664_v7  ;;  %v651_v62 = vsel %vm314_vm0, %v650_v26, %v2878_v8  ;;  %v663_v63 = vsel %vm314_vm0, %v662_v39, %v2892_v10 }
  0x4b   : > { %v586_v0 = vrot.slane %v557_v58, 4  ;;  %v657_v1 = vperm.slane %v651_v62, %v2664_v7  ;;  %v669_v2 = vperm.slane %v663_v63, %v2664_v7  ;;  %v676_v16 = vrot.slane %v2915_v49, 4 }
  0x4c   : > { %v610_v11 = vrot.slane %v581_v61, 4  ;;  %v686_v22 = vrot.slane %v2921_v51, 4  ;;  %v688_v23 = vrot.slane %v2918_v38, 4  ;;  %v675_v29 = vsel %vm314_vm0, %v674_v3, %v2915_v49 }
  0x4d   : > { %v587_v28 = vsel %vm314_vm0, %v586_v0, %v545_v57  ;;  %v698_v32 = vrot.slane %v669_v2, 4  ;;  %v588_v33 = vrot.slane %v545_v57, 4  ;;  %v681_v42 = vperm.slane %v675_v29, %v2664_v7 }
  0x4e   : > { %v593_v34 = vperm.slane %v587_v28, %v2687_v19  ;;  %v611_v35 = vsel %vm314_vm0, %v610_v11, %v569_v60  ;;  %v687_v43 = vsel %vm314_vm0, %v686_v22, %v2918_v38  ;;  %v612_v55 = vrot.slane %v569_v60, 4 }
  0x4f   : > { %v617_v44 = vperm.slane %v611_v35, %v2687_v19  ;;  %v693_v47 = vperm.slane %v687_v43, %v2664_v7  ;;  %v699_v46 = vsel %vm314_vm0, %v698_v32, %v657_v1  ;;  %v589_v48 = vsel %vm314_vm0, %v557_v58, %v588_v33 }
  0x50   : > { %v705_v50 = vperm.slane %v699_v46, %v2687_v19  ;;  %v636_v53 = vrot.slane %v593_v34, 4  ;;  %v597_v54 = vperm.slane %v589_v48, %v2687_v19  ;;  %v700_v57 = vrot.slane %v657_v1, 4 }
  0x51   : > { %v634_v5 = vrot.slane %v617_v44, 4  ;;  %v722_v9 = vrot.slane %v693_v47, 4  ;;  %v724_v14 = vrot.slane %v681_v42, 4  ;;  %v613_v27 = vsel %vm314_vm0, %v581_v61, %v612_v55 }
  0x52   : > { %v637_v15 = vsel %vm314_vm0, %v617_v44, %v636_v53  ;;  %v748_v20 = vrot.slane %v705_v50, 4  ;;  %v640_v26 = vrot.slane %v597_v54, 4  ;;  %v621_v30 = vperm.slane %v613_v27, %v2687_v19 }
  0x53   : > { %v635_v39 = vsel %vm314_vm0, %v634_v5, %v593_v34  ;;  %v723_v58 = vsel %vm314_vm0, %v722_v9, %v681_v42  ;;  %2124 = vst [vmem:[%s2761_s16 + $0x90] sm:$0xff] %v637_v15  ;;  %v701_v37 = vsel %vm314_vm0, %v669_v2, %v700_v57  ;;  %v725_v63 = vsel %vm314_vm0, %v693_v47, %v724_v14  ;;  %v3028_v57 = vld [vmem:[%s2649_s15 + $0x90] sm:$0xff] }
  0x54   : > { %2122 = vst [vmem:[%s2761_s16 + $0x80] sm:$0xff] %v635_v39  ;;  %v729_v60 = vperm.slane %v723_v58, %v2687_v19  ;;  %v709_v62 = vperm.slane %v701_v37, %v2687_v19  ;;  %v541_v61 = vsel %vm314_vm0, %v2836_v21, %v540_v12  ;;  %v638_v0 = vrot.slane %v621_v30, 4 }
  0x55   : > { %v733_v1 = vperm.slane %v725_v63, %v2687_v19  ;;  %v641_v3 = vsel %vm314_vm0, %v621_v30, %v640_v26  ;;  %v549_v2 = vperm.slane %v541_v61, %v2664_v7  ;;  %v553_v31 = vsel %vm314_vm0, %v2852_v41, %v552_v17  ;;  %v3036_v26 = vld [vmem:[%s2649_s15 + $0x10] sm:$0xff] }
  0x56   : > { %v746_v11 = vrot.slane %v729_v60, 4  ;;  %v749_v22 = vsel %vm314_vm0, %v729_v60, %v748_v20  ;;  %2128 = vst [vmem:[%s2761_s16 + $0xb0] sm:$0xff] %v641_v3  ;;  %v752_v28 = vrot.slane %v709_v62, 4  ;;  %v639_v21 = vsel %vm314_vm0, %v638_v0, %v597_v54  ;;  %v3041_v60 = vld [vmem:[%s2649_s15 + $0x50] sm:$0xff] }
  0x57   : > { %2125 = vst [vmem:[%s2761_s16 + $0x98] sm:$0xff] %v749_v22  ;;  %v750_v12 = vrot.slane %v733_v1, 4  ;;  %v561_v29 = vperm.slane %v553_v31, %v2664_v7  ;;  %v565_v32 = vsel %vm314_vm0, %v2865_v4, %v564_v18  ;;  %v577_v17 = vsel %vm314_vm0, %v2868_v6, %v576_v25  ;;  %v3057_v31 = vld [vmem:[%s2649_s15 + $0x190] sm:$0xff] }
  0x58   : > { %v747_v33 = vsel %vm314_vm0, %v746_v11, %v705_v50  ;;  %2126 = vst [vmem:[%s2761_s16 + $0xa0] sm:$0xff] %v639_v21  ;;  %v753_v40 = vsel %vm314_vm0, %v733_v1, %v752_v28  ;;  %v573_v41 = vperm.slane %v565_v32, %v2664_v7  ;;  %v585_v45 = vperm.slane %v577_v17, %v2664_v7  ;;  %v3048_v1 = vld [vmem:[%s2649_s15 + $0x110] sm:$0xff] }
  0x59   : > { %2123 = vst [vmem:[%s2761_s16 + $0x88] sm:$0xff] %v747_v33  ;;  %v751_v34 = vsel %vm314_vm0, %v750_v12, %v709_v62  ;;  %v598_v35 = vrot.slane %v561_v29, 4  ;;  %v653_v4 = vsel %vm314_vm0, %v2881_v13, %v652_v36  ;;  %v665_v52 = vsel %vm314_vm0, %v2884_v56, %v664_v59  ;;  %v3044_v62 = vld [vmem:[%s2649_s15 + $0xd0] sm:$0xff] }
  0x5a   : > { %2127 = vst [vmem:[%s2761_s16 + $0xa8] sm:$0xff] %v751_v34  ;;  %v661_v18 = vperm.slane %v653_v4, %v2664_v7  ;;  %v677_v6 = vsel %vm314_vm0, %v2903_v24, %v676_v16  ;;  %v689_v8 = vsel %vm314_vm0, %v2921_v51, %v688_v23  ;;  %v622_v25 = vrot.slane %v585_v45, 4  ;;  %v3054_v28 = vld [vmem:[%s2649_s15 + $0x150] sm:$0xff] }
  0x5b   : > { %2129 = vst [vmem:[%s2761_s16 + $0xb8] sm:$0xff] %v753_v40  ;;  %v599_v13 = vsel %vm314_vm0, %v598_v35, %v549_v2  ;;  %v673_v36 = vperm.slane %v665_v52, %v2664_v7  ;;  %v685_v10 = vperm.slane %v677_v6, %v2664_v7  ;;  %v697_v49 = vperm.slane %v689_v8, %v2664_v7  ;;  %v3060_v21 = vld [vmem:[%s2649_s15 + $0x1d0] sm:$0xff] }
  0x5c   : > { %v605_v56 = vperm.slane %v599_v13, %v2687_v19  ;;  %v600_v59 = vrot.slane %v549_v2, 4  ;;  %v624_v42 = vrot.slane %v573_v41, 4  ;;  %v623_v24 = vsel %vm314_vm0, %v622_v25, %v573_v41  ;;  %v3070_v41 = vld [vmem:[%s2649_s15 + $0x210] sm:$0xff] }
  0x5d   : > { %v710_v38 = vrot.slane %v673_v36, 4  ;;  %v712_v16 = vrot.slane %v661_v18, 4  ;;  %v736_v51 = vrot.slane %v685_v10, 4  ;;  %v629_v23 = vperm.slane %v623_v24, %v2687_v19  ;;  %v3073_v17 = vld [vmem:[%s2649_s15 + $0x290] sm:$0xff] }
  0x5e   : > { %v734_v43 = vrot.slane %v697_v49, 4  ;;  %v644_v44 = vrot.slane %v605_v56, 4  ;;  %v601_v47 = vsel %vm314_vm0, %v561_v29, %v600_v59  ;;  %v625_v50 = vsel %vm314_vm0, %v585_v45, %v624_v42  ;;  %v3076_v34 = vld [vmem:[%s2649_s15 + $0x2d0] sm:$0xff] }
  0x5f   : > { %v711_v46 = vsel %vm314_vm0, %v710_v38, %v661_v18  ;;  %v609_v48 = vperm.slane %v601_v47, %v2687_v19  ;;  %v713_v53 = vsel %vm314_vm0, %v673_v36, %v712_v16  ;;  %v642_v54 = vrot.slane %v629_v23, 4  ;;  %v3084_v52 = vld [vmem:[%s2649_s15 + $0x250] sm:$0xff] }
  0x60   : > { %v717_v55 = vperm.slane %v711_v46, %v2687_v19  ;;  %v735_v5 = vsel %vm314_vm0, %v734_v43, %v685_v10  ;;  %v645_v9 = vsel %vm314_vm0, %v629_v23, %v644_v44  ;;  %v633_v15 = vperm.slane %v625_v50, %v2687_v19  ;;  %v3095_v10 = vld [vmem:[%s2649_s15 + $0x390] sm:$0xff] }
  0x61   : > { %v741_v14 = vperm.slane %v735_v5, %v2687_v19  ;;  %2132 = vst [vmem:[%s2761_s16 + $0xd0] sm:$0xff] %v645_v9  ;;  %v721_v20 = vperm.slane %v713_v53, %v2687_v19  ;;  %v737_v27 = vsel %vm314_vm0, %v697_v49, %v736_v51  ;;  %v643_v39 = vsel %vm314_vm0, %v642_v54, %v605_v56  ;;  %v3107_v16 = vld [vmem:[%s2649_s15 + $0x310] sm:$0xff] }
  0x62   : > { %v756_v58 = vrot.slane %v717_v55, 4  ;;  %v745_v30 = vperm.slane %v737_v27, %v2687_v19  ;;  %v648_v37 = vrot.slane %v609_v48, 4  ;;  %2130 = vst [vmem:[%s2761_s16 + $0xc0] sm:$0xff] %v643_v39  ;;  %v646_v61 = vrot.slane %v633_v15, 4  ;;  %v3110_v51 = vld [vmem:[%s2649_s15 + $0x350] sm:$0xff] }
  0x63   : > { %v754_v63 = vrot.slane %v741_v14, 4  ;;  %v760_v0 = vrot.slane %v721_v20, 4  ;;  %v762_v3 = vrot.slane %v3028_v57, 4  ;;  %v764_v12 = vrot.slane %v3036_v26, 4  ;;  %v3113_v23 = vld [vmem:[%s2649_s15 + $0x3d0] sm:$0xff] }
  0x64   : > { %v757_v2 = vsel %vm314_vm0, %v741_v14, %v756_v58  ;;  %v758_v11 = vrot.slane %v745_v30, 4  ;;  %v649_v22 = vsel %vm314_vm0, %v633_v15, %v648_v37  ;;  %v647_v32 = vsel %vm314_vm0, %v646_v61, %v609_v48 }
  0x65   : > { %v755_v29 = vsel %vm314_vm0, %v754_v63, %v717_v55  ;;  %2133 = vst [vmem:[%s2761_s16 + $0xd8] sm:$0xff] %v757_v2  ;;  %v761_v33 = vsel %vm314_vm0, %v745_v30, %v760_v0  ;;  %v763_v40 = vsel %vm314_vm0, %v762_v3, %v3036_v26  ;;  %v774_v4 = vrot.slane %v3044_v62, 4 }
  0x66   : > { %2131 = vst [vmem:[%s2761_s16 + $0xc8] sm:$0xff] %v755_v29  ;;  %v759_v45 = vsel %vm314_vm0, %v758_v11, %v721_v20  ;;  %v769_v35 = vperm.slane %v763_v40, %v2664_v7  ;;  %v776_v18 = vrot.slane %v3041_v60, 4  ;;  %v786_v6 = vrot.slane %v3057_v31, 4 }
  0x67   : > { %2134 = vst [vmem:[%s2761_s16 + $0xe0] sm:$0xff] %v647_v32  ;;  %v788_v8 = vrot.slane %v3048_v1, 4  ;;  %v798_v13 = vrot.slane %v3060_v21, 4  ;;  %v800_v25 = vrot.slane %v3054_v28, 4  ;;  %v775_v36 = vsel %vm314_vm0, %v774_v4, %v3041_v60 }
  0x68   : > { %2135 = vst [vmem:[%s2761_s16 + $0xe8] sm:$0xff] %v759_v45  ;;  %v874_v56 = vrot.slane %v3073_v17, 4  ;;  %v876_v49 = vrot.slane %v3070_v41, 4  ;;  %v886_v59 = vrot.slane %v3076_v34, 4  ;;  %v781_v42 = vperm.slane %v775_v36, %v2664_v7 }
  0x69   : > { %2136 = vst [vmem:[%s2761_s16 + $0xf0] sm:$0xff] %v649_v22  ;;  %v787_v24 = vsel %vm314_vm0, %v786_v6, %v3048_v1  ;;  %v799_v38 = vsel %vm314_vm0, %v798_v13, %v3054_v28  ;;  %v888_v43 = vrot.slane %v3084_v52, 4  ;;  %v898_v55 = vrot.slane %v3095_v10, 4 }
  0x6a   : > { %2137 = vst [vmem:[%s2761_s16 + $0xf8] sm:$0xff] %v761_v33  ;;  %v793_v44 = vperm.slane %v787_v24, %v2664_v7  ;;  %v805_v47 = vperm.slane %v799_v38, %v2664_v7  ;;  %v875_v46 = vsel %vm314_vm0, %v874_v56, %v3070_v41  ;;  %v887_v48 = vsel %vm314_vm0, %v886_v59, %v3084_v52 }
  0x6b   : > { %v810_v50 = vrot.slane %v781_v42, 4  ;;  %v881_v53 = vperm.slane %v875_v46, %v2664_v7  ;;  %v893_v54 = vperm.slane %v887_v48, %v2664_v7  ;;  %v900_v9 = vrot.slane %v3107_v16, 4 }
  0x6c   : > { %v834_v5 = vrot.slane %v805_v47, 4  ;;  %v910_v14 = vrot.slane %v3113_v23, 4  ;;  %v912_v15 = vrot.slane %v3110_v51, 4  ;;  %v899_v27 = vsel %vm314_vm0, %v898_v55, %v3107_v16 }
  0x6d   : > { %v811_v20 = vsel %vm314_vm0, %v810_v50, %v769_v35  ;;  %v922_v39 = vrot.slane %v893_v54, 4  ;;  %v812_v58 = vrot.slane %v769_v35, 4  ;;  %v905_v63 = vperm.slane %v899_v27, %v2664_v7 }
  0x6e   : > { %v817_v30 = vperm.slane %v811_v20, %v2687_v19  ;;  %v835_v37 = vsel %vm314_vm0, %v834_v5, %v793_v44  ;;  %v911_v61 = vsel %vm314_vm0, %v910_v14, %v3110_v51  ;;  %v836_v33 = vrot.slane %v793_v44, 4 }
  0x6f   : > { %v841_v0 = vperm.slane %v835_v37, %v2687_v19  ;;  %v917_v3 = vperm.slane %v911_v61, %v2664_v7  ;;  %v923_v2 = vsel %vm314_vm0, %v922_v39, %v881_v53  ;;  %v813_v11 = vsel %vm314_vm0, %v781_v42, %v812_v58 }
  0x70   : > { %v929_v22 = vperm.slane %v923_v2, %v2687_v19  ;;  %v860_v29 = vrot.slane %v817_v30, 4  ;;  %v821_v32 = vperm.slane %v813_v11, %v2687_v19  ;;  %v924_v35 = vrot.slane %v881_v53, 4 }
  0x71   : > { %v858_v40 = vrot.slane %v841_v0, 4  ;;  %v946_v45 = vrot.slane %v917_v3, 4  ;;  %v948_v4 = vrot.slane %v905_v63, 4  ;;  %v837_v36 = vsel %vm314_vm0, %v805_v47, %v836_v33 }
  0x72   : > { %v861_v6 = vsel %vm314_vm0, %v841_v0, %v860_v29  ;;  %v972_v13 = vrot.slane %v929_v22, 4  ;;  %v864_v56 = vrot.slane %v821_v32, 4  ;;  %v845_v24 = vperm.slane %v837_v36, %v2687_v19 }
  0x73   : > { %v859_v59 = vsel %vm314_vm0, %v858_v40, %v817_v30  ;;  %v947_v42 = vsel %vm314_vm0, %v946_v45, %v905_v63  ;;  %2140 = vst [vmem:[%s2761_s16 + $0x110] sm:$0xff] %v861_v6  ;;  %v925_v38 = vsel %vm314_vm0, %v893_v54, %v924_v35  ;;  %v949_v48 = vsel %vm314_vm0, %v917_v3, %v948_v4  ;;  %v3220_v35 = vld [vmem:[%s2649_s15 + $0x98] sm:$0xff] }
  0x74   : > { %2138 = vst [vmem:[%s2761_s16 + $0x100] sm:$0xff] %v859_v59  ;;  %v953_v44 = vperm.slane %v947_v42, %v2687_v19  ;;  %v933_v46 = vperm.slane %v925_v38, %v2687_v19  ;;  %v765_v47 = vsel %vm314_vm0, %v3028_v57, %v764_v12  ;;  %v862_v50 = vrot.slane %v845_v24, 4 }
  0x75   : > { %v957_v53 = vperm.slane %v949_v48, %v2687_v19  ;;  %v865_v55 = vsel %vm314_vm0, %v845_v24, %v864_v56  ;;  %v773_v54 = vperm.slane %v765_v47, %v2664_v7  ;;  %v777_v26 = vsel %vm314_vm0, %v3044_v62, %v776_v18  ;;  %v3228_v56 = vld [vmem:[%s2649_s15 + $0x18] sm:$0xff] }
  0x76   : > { %v970_v5 = vrot.slane %v953_v44, 4  ;;  %v973_v14 = vsel %vm314_vm0, %v953_v44, %v972_v13  ;;  %2144 = vst [vmem:[%s2761_s16 + $0x130] sm:$0xff] %v865_v55  ;;  %v976_v20 = vrot.slane %v933_v46, 4  ;;  %v863_v57 = vsel %vm314_vm0, %v862_v50, %v821_v32  ;;  %v3233_v44 = vld [vmem:[%s2649_s15 + $0x58] sm:$0xff] }
  0x77   : > { %2141 = vst [vmem:[%s2761_s16 + $0x118] sm:$0xff] %v973_v14  ;;  %v974_v12 = vrot.slane %v957_v53, 4  ;;  %v785_v27 = vperm.slane %v777_v26, %v2664_v7  ;;  %v789_v39 = vsel %vm314_vm0, %v3057_v31, %v788_v8  ;;  %v801_v18 = vsel %vm314_vm0, %v3060_v21, %v800_v25  ;;  %v3249_v26 = vld [vmem:[%s2649_s15 + $0x198] sm:$0xff] }
  0x78   : > { %v971_v58 = vsel %vm314_vm0, %v970_v5, %v929_v22  ;;  %2142 = vst [vmem:[%s2761_s16 + $0x120] sm:$0xff] %v863_v57  ;;  %v977_v60 = vsel %vm314_vm0, %v957_v53, %v976_v20  ;;  %v797_v62 = vperm.slane %v789_v39, %v2664_v7  ;;  %v809_v1 = vperm.slane %v801_v18, %v2664_v7  ;;  %v3240_v53 = vld [vmem:[%s2649_s15 + $0x118] sm:$0xff] }
  0x79   : > { %2139 = vst [vmem:[%s2761_s16 + $0x108] sm:$0xff] %v971_v58  ;;  %v975_v30 = vsel %vm314_vm0, %v974_v12, %v933_v46  ;;  %v822_v37 = vrot.slane %v785_v27, 4  ;;  %v877_v31 = vsel %vm314_vm0, %v3073_v17, %v876_v49  ;;  %v889_v28 = vsel %vm314_vm0, %v3076_v34, %v888_v43  ;;  %v3236_v46 = vld [vmem:[%s2649_s15 + $0xd8] sm:$0xff] }
  0x7a   : > { %2143 = vst [vmem:[%s2761_s16 + $0x128] sm:$0xff] %v975_v30  ;;  %v885_v8 = vperm.slane %v877_v31, %v2664_v7  ;;  %v901_v21 = vsel %vm314_vm0, %v3095_v10, %v900_v9  ;;  %v913_v41 = vsel %vm314_vm0, %v3113_v23, %v912_v15  ;;  %v846_v25 = vrot.slane %v809_v1, 4  ;;  %v3246_v20 = vld [vmem:[%s2649_s15 + $0x158] sm:$0xff] }
  0x7b   : > { %2145 = vst [vmem:[%s2761_s16 + $0x138] sm:$0xff] %v977_v60  ;;  %v823_v17 = vsel %vm314_vm0, %v822_v37, %v773_v54  ;;  %v897_v49 = vperm.slane %v889_v28, %v2664_v7  ;;  %v909_v52 = vperm.slane %v901_v21, %v2664_v7  ;;  %v921_v16 = vperm.slane %v913_v41, %v2664_v7  ;;  %v3252_v57 = vld [vmem:[%s2649_s15 + $0x1d8] sm:$0xff] }
  0x7c   : > { %v829_v34 = vperm.slane %v823_v17, %v2687_v19  ;;  %v824_v43 = vrot.slane %v773_v54, 4  ;;  %v848_v63 = vrot.slane %v797_v62, 4  ;;  %v847_v10 = vsel %vm314_vm0, %v846_v25, %v797_v62  ;;  %v3262_v62 = vld [vmem:[%s2649_s15 + $0x218] sm:$0xff] }
  0x7d   : > { %v934_v51 = vrot.slane %v897_v49, 4  ;;  %v936_v9 = vrot.slane %v885_v8, 4  ;;  %v960_v23 = vrot.slane %v909_v52, 4  ;;  %v853_v15 = vperm.slane %v847_v10, %v2687_v19  ;;  %v3265_v18 = vld [vmem:[%s2649_s15 + $0x298] sm:$0xff] }
  0x7e   : > { %v958_v61 = vrot.slane %v921_v16, 4  ;;  %v868_v0 = vrot.slane %v829_v34, 4  ;;  %v825_v3 = vsel %vm314_vm0, %v785_v27, %v824_v43  ;;  %v849_v22 = vsel %vm314_vm0, %v809_v1, %v848_v63  ;;  %v3268_v30 = vld [vmem:[%s2649_s15 + $0x2d8] sm:$0xff] }
  0x7f   : > { %v935_v2 = vsel %vm314_vm0, %v934_v51, %v885_v8  ;;  %v833_v11 = vperm.slane %v825_v3, %v2687_v19  ;;  %v937_v29 = vsel %vm314_vm0, %v897_v49, %v936_v9  ;;  %v866_v32 = vrot.slane %v853_v15, 4  ;;  %v3276_v28 = vld [vmem:[%s2649_s15 + $0x258] sm:$0xff] }
  0x80   : > { %v941_v33 = vperm.slane %v935_v2, %v2687_v19  ;;  %v959_v40 = vsel %vm314_vm0, %v958_v61, %v909_v52  ;;  %v869_v45 = vsel %vm314_vm0, %v853_v15, %v868_v0  ;;  %v857_v6 = vperm.slane %v849_v22, %v2687_v19  ;;  %v3287_v52 = vld [vmem:[%s2649_s15 + $0x398] sm:$0xff] }
  0x81   : > { %v965_v4 = vperm.slane %v959_v40, %v2687_v19  ;;  %2148 = vst [vmem:[%s2761_s16 + $0x150] sm:$0xff] %v869_v45  ;;  %v945_v13 = vperm.slane %v937_v29, %v2687_v19  ;;  %v961_v36 = vsel %vm314_vm0, %v921_v16, %v960_v23  ;;  %v867_v59 = vsel %vm314_vm0, %v866_v32, %v829_v34  ;;  %v3299_v9 = vld [vmem:[%s2649_s15 + $0x318] sm:$0xff] }
  0x82   : > { %v980_v42 = vrot.slane %v941_v33, 4  ;;  %v969_v24 = vperm.slane %v961_v36, %v2687_v19  ;;  %v872_v38 = vrot.slane %v833_v11, 4  ;;  %2146 = vst [vmem:[%s2761_s16 + $0x140] sm:$0xff] %v867_v59  ;;  %v870_v47 = vrot.slane %v857_v6, 4  ;;  %v3302_v23 = vld [vmem:[%s2649_s15 + $0x358] sm:$0xff] }
  0x83   : > { %v978_v48 = vrot.slane %v965_v4, 4  ;;  %v984_v50 = vrot.slane %v945_v13, 4  ;;  %v986_v55 = vrot.slane %v3220_v35, 4  ;;  %v988_v12 = vrot.slane %v3228_v56, 4  ;;  %v3305_v15 = vld [vmem:[%s2649_s15 + $0x3d8] sm:$0xff] }
  0x84   : > { %v981_v54 = vsel %vm314_vm0, %v965_v4, %v980_v42  ;;  %v982_v5 = vrot.slane %v969_v24, 4  ;;  %v873_v14 = vsel %vm314_vm0, %v857_v6, %v872_v38  ;;  %v871_v39 = vsel %vm314_vm0, %v870_v47, %v833_v11 }
  0x85   : > { %v979_v27 = vsel %vm314_vm0, %v978_v48, %v941_v33  ;;  %2149 = vst [vmem:[%s2761_s16 + $0x158] sm:$0xff] %v981_v54  ;;  %v985_v58 = vsel %vm314_vm0, %v969_v24, %v984_v50  ;;  %v987_v60 = vsel %vm314_vm0, %v986_v55, %v3228_v56  ;;  %v998_v31 = vrot.slane %v3236_v46, 4 }
  0x86   : > { %2147 = vst [vmem:[%s2761_s16 + $0x148] sm:$0xff] %v979_v27  ;;  %v983_v1 = vsel %vm314_vm0, %v982_v5, %v945_v13  ;;  %v993_v37 = vperm.slane %v987_v60, %v2664_v7  ;;  %v1000_v8 = vrot.slane %v3233_v44, 4  ;;  %v1010_v21 = vrot.slane %v3249_v26, 4 }
  0x87   : > { %2150 = vst [vmem:[%s2761_s16 + $0x160] sm:$0xff] %v871_v39  ;;  %v1012_v41 = vrot.slane %v3240_v53, 4  ;;  %v1022_v17 = vrot.slane %v3252_v57, 4  ;;  %v1024_v25 = vrot.slane %v3246_v20, 4  ;;  %v999_v49 = vsel %vm314_vm0, %v998_v31, %v3233_v44 }
  0x88   : > { %2151 = vst [vmem:[%s2761_s16 + $0x168] sm:$0xff] %v983_v1  ;;  %v1098_v34 = vrot.slane %v3265_v18, 4  ;;  %v1100_v16 = vrot.slane %v3262_v62, 4  ;;  %v1110_v43 = vrot.slane %v3268_v30, 4  ;;  %v1005_v63 = vperm.slane %v999_v49, %v2664_v7 }
  0x89   : > { %2152 = vst [vmem:[%s2761_s16 + $0x170] sm:$0xff] %v873_v14  ;;  %v1011_v10 = vsel %vm314_vm0, %v1010_v21, %v3240_v53  ;;  %v1023_v51 = vsel %vm314_vm0, %v1022_v17, %v3246_v20  ;;  %v1112_v61 = vrot.slane %v3276_v28, 4  ;;  %v1122_v33 = vrot.slane %v3287_v52, 4 }
  0x8a   : > { %2153 = vst [vmem:[%s2761_s16 + $0x178] sm:$0xff] %v985_v58  ;;  %v1017_v0 = vperm.slane %v1011_v10, %v2664_v7  ;;  %v1029_v3 = vperm.slane %v1023_v51, %v2664_v7  ;;  %v1099_v2 = vsel %vm314_vm0, %v1098_v34, %v3262_v62  ;;  %v1111_v11 = vsel %vm314_vm0, %v1110_v43, %v3276_v28 }
  0x8b   : > { %v1034_v22 = vrot.slane %v1005_v63, 4  ;;  %v1105_v29 = vperm.slane %v1099_v2, %v2664_v7  ;;  %v1117_v32 = vperm.slane %v1111_v11, %v2664_v7  ;;  %v1124_v45 = vrot.slane %v3299_v9, 4 }
  0x8c   : > { %v1058_v40 = vrot.slane %v1029_v3, 4  ;;  %v1134_v4 = vrot.slane %v3305_v15, 4  ;;  %v1136_v6 = vrot.slane %v3302_v23, 4  ;;  %v1123_v36 = vsel %vm314_vm0, %v1122_v33, %v3299_v9 }
  0x8d   : > { %v1035_v13 = vsel %vm314_vm0, %v1034_v22, %v993_v37  ;;  %v1146_v59 = vrot.slane %v1117_v32, 4  ;;  %v1036_v42 = vrot.slane %v993_v37, 4  ;;  %v1129_v48 = vperm.slane %v1123_v36, %v2664_v7 }
  0x8e   : > { %v1041_v24 = vperm.slane %v1035_v13, %v2687_v19  ;;  %v1059_v38 = vsel %vm314_vm0, %v1058_v40, %v1017_v0  ;;  %v1135_v47 = vsel %vm314_vm0, %v1134_v4, %v3302_v23  ;;  %v1060_v58 = vrot.slane %v1017_v0, 4 }
  0x8f   : > { %v1065_v50 = vperm.slane %v1059_v38, %v2687_v19  ;;  %v1141_v55 = vperm.slane %v1135_v47, %v2664_v7  ;;  %v1147_v54 = vsel %vm314_vm0, %v1146_v59, %v1105_v29  ;;  %v1037_v5 = vsel %vm314_vm0, %v1005_v63, %v1036_v42 }
  0x90   : > { %v1153_v14 = vperm.slane %v1147_v54, %v2687_v19  ;;  %v1084_v27 = vrot.slane %v1041_v24, 4  ;;  %v1045_v39 = vperm.slane %v1037_v5, %v2687_v19  ;;  %v1148_v37 = vrot.slane %v1105_v29, 4 }
  0x91   : > { %v1082_v60 = vrot.slane %v1065_v50, 4  ;;  %v1170_v1 = vrot.slane %v1141_v55, 4  ;;  %v1172_v31 = vrot.slane %v1129_v48, 4  ;;  %v1061_v49 = vsel %vm314_vm0, %v1029_v3, %v1060_v58 }
  0x92   : > { %v1085_v21 = vsel %vm314_vm0, %v1065_v50, %v1084_v27  ;;  %v1196_v17 = vrot.slane %v1153_v14, 4  ;;  %v1088_v34 = vrot.slane %v1045_v39, 4  ;;  %v1069_v10 = vperm.slane %v1061_v49, %v2687_v19 }
  0x93   : > { %v1083_v43 = vsel %vm314_vm0, %v1082_v60, %v1041_v24  ;;  %v1171_v63 = vsel %vm314_vm0, %v1170_v1, %v1129_v48  ;;  %2156 = vst [vmem:[%s2761_s16 + $0x190] sm:$0xff] %v1085_v21  ;;  %v1149_v51 = vsel %vm314_vm0, %v1117_v32, %v1148_v37  ;;  %v1173_v11 = vsel %vm314_vm0, %v1141_v55, %v1172_v31  ;;  %v3412_v37 = vld [vmem:[%s2649_s15 + $0xa0] sm:$0xff] }
  0x94   : > { %2154 = vst [vmem:[%s2761_s16 + $0x180] sm:$0xff] %v1083_v43  ;;  %v1177_v0 = vperm.slane %v1171_v63, %v2687_v19  ;;  %v1157_v2 = vperm.slane %v1149_v51, %v2687_v19  ;;  %v989_v3 = vsel %vm314_vm0, %v3220_v35, %v988_v12  ;;  %v1086_v22 = vrot.slane %v1069_v10, 4 }
  0x95   : > { %v1181_v29 = vperm.slane %v1173_v11, %v2687_v19  ;;  %v1089_v33 = vsel %vm314_vm0, %v1069_v10, %v1088_v34  ;;  %v997_v32 = vperm.slane %v989_v3, %v2664_v7  ;;  %v1001_v56 = vsel %vm314_vm0, %v3236_v46, %v1000_v8  ;;  %v3420_v34 = vld [vmem:[%s2649_s15 + $0x20] sm:$0xff] }
  0x96   : > { %v1194_v40 = vrot.slane %v1177_v0, 4  ;;  %v1197_v4 = vsel %vm314_vm0, %v1177_v0, %v1196_v17  ;;  %2160 = vst [vmem:[%s2761_s16 + $0x1b0] sm:$0xff] %v1089_v33  ;;  %v1200_v13 = vrot.slane %v1157_v2, 4  ;;  %v1087_v35 = vsel %vm314_vm0, %v1086_v22, %v1045_v39  ;;  %v3425_v0 = vld [vmem:[%s2649_s15 + $0x60] sm:$0xff] }
  0x97   : > { %2157 = vst [vmem:[%s2761_s16 + $0x198] sm:$0xff] %v1197_v4  ;;  %v1198_v12 = vrot.slane %v1181_v29, 4  ;;  %v1009_v36 = vperm.slane %v1001_v56, %v2664_v7  ;;  %v1013_v59 = vsel %vm314_vm0, %v3249_v26, %v1012_v41  ;;  %v1025_v8 = vsel %vm314_vm0, %v3252_v57, %v1024_v25  ;;  %v3441_v56 = vld [vmem:[%s2649_s15 + $0x1a0] sm:$0xff] }
  0x98   : > { %v1195_v42 = vsel %vm314_vm0, %v1194_v40, %v1153_v14  ;;  %2158 = vst [vmem:[%s2761_s16 + $0x1a0] sm:$0xff] %v1087_v35  ;;  %v1201_v44 = vsel %vm314_vm0, %v1181_v29, %v1200_v13  ;;  %v1021_v46 = vperm.slane %v1013_v59, %v2664_v7  ;;  %v1033_v53 = vperm.slane %v1025_v8, %v2664_v7  ;;  %v3432_v29 = vld [vmem:[%s2649_s15 + $0x120] sm:$0xff] }
  0x99   : > { %2155 = vst [vmem:[%s2761_s16 + $0x188] sm:$0xff] %v1195_v42  ;;  %v1199_v24 = vsel %vm314_vm0, %v1198_v12, %v1157_v2  ;;  %v1046_v38 = vrot.slane %v1009_v36, 4  ;;  %v1101_v26 = vsel %vm314_vm0, %v3265_v18, %v1100_v16  ;;  %v1113_v20 = vsel %vm314_vm0, %v3268_v30, %v1112_v61  ;;  %v3428_v2 = vld [vmem:[%s2649_s15 + $0xe0] sm:$0xff] }
  0x9a   : > { %2159 = vst [vmem:[%s2761_s16 + $0x1a8] sm:$0xff] %v1199_v24  ;;  %v1109_v41 = vperm.slane %v1101_v26, %v2664_v7  ;;  %v1125_v57 = vsel %vm314_vm0, %v3287_v52, %v1124_v45  ;;  %v1137_v62 = vsel %vm314_vm0, %v3305_v15, %v1136_v6  ;;  %v1070_v25 = vrot.slane %v1033_v53, 4  ;;  %v3438_v13 = vld [vmem:[%s2649_s15 + $0x160] sm:$0xff] }
  0x9b   : > { %2161 = vst [vmem:[%s2761_s16 + $0x1b8] sm:$0xff] %v1201_v44  ;;  %v1047_v18 = vsel %vm314_vm0, %v1046_v38, %v997_v32  ;;  %v1121_v16 = vperm.slane %v1113_v20, %v2664_v7  ;;  %v1133_v28 = vperm.slane %v1125_v57, %v2664_v7  ;;  %v1145_v9 = vperm.slane %v1137_v62, %v2664_v7  ;;  %v3444_v35 = vld [vmem:[%s2649_s15 + $0x1e0] sm:$0xff] }
  0x9c   : > { %v1053_v30 = vperm.slane %v1047_v18, %v2687_v19  ;;  %v1048_v61 = vrot.slane %v997_v32, 4  ;;  %v1072_v48 = vrot.slane %v1021_v46, 4  ;;  %v1071_v52 = vsel %vm314_vm0, %v1070_v25, %v1021_v46  ;;  %v3454_v46 = vld [vmem:[%s2649_s15 + $0x220] sm:$0xff] }
  0x9d   : > { %v1158_v23 = vrot.slane %v1121_v16, 4  ;;  %v1160_v45 = vrot.slane %v1109_v41, 4  ;;  %v1184_v15 = vrot.slane %v1133_v28, 4  ;;  %v1077_v6 = vperm.slane %v1071_v52, %v2687_v19  ;;  %v3457_v8 = vld [vmem:[%s2649_s15 + $0x2a0] sm:$0xff] }
  0x9e   : > { %v1182_v47 = vrot.slane %v1145_v9, 4  ;;  %v1092_v50 = vrot.slane %v1053_v30, 4  ;;  %v1049_v55 = vsel %vm314_vm0, %v1009_v36, %v1048_v61  ;;  %v1073_v14 = vsel %vm314_vm0, %v1033_v53, %v1072_v48  ;;  %v3460_v24 = vld [vmem:[%s2649_s15 + $0x2e0] sm:$0xff] }
  0x9f   : > { %v1159_v54 = vsel %vm314_vm0, %v1158_v23, %v1109_v41  ;;  %v1057_v5 = vperm.slane %v1049_v55, %v2687_v19  ;;  %v1161_v27 = vsel %vm314_vm0, %v1121_v16, %v1160_v45  ;;  %v1090_v39 = vrot.slane %v1077_v6, 4  ;;  %v3468_v20 = vld [vmem:[%s2649_s15 + $0x260] sm:$0xff] }
  0xa0   : > { %v1165_v58 = vperm.slane %v1159_v54, %v2687_v19  ;;  %v1183_v60 = vsel %vm314_vm0, %v1182_v47, %v1133_v28  ;;  %v1093_v1 = vsel %vm314_vm0, %v1077_v6, %v1092_v50  ;;  %v1081_v21 = vperm.slane %v1073_v14, %v2687_v19  ;;  %v3479_v28 = vld [vmem:[%s2649_s15 + $0x3a0] sm:$0xff] }
  0xa1   : > { %v1189_v31 = vperm.slane %v1183_v60, %v2687_v19  ;;  %2164 = vst [vmem:[%s2761_s16 + $0x1d0] sm:$0xff] %v1093_v1  ;;  %v1169_v17 = vperm.slane %v1161_v27, %v2687_v19  ;;  %v1185_v49 = vsel %vm314_vm0, %v1145_v9, %v1184_v15  ;;  %v1091_v43 = vsel %vm314_vm0, %v1090_v39, %v1053_v30  ;;  %v3491_v45 = vld [vmem:[%s2649_s15 + $0x320] sm:$0xff] }
  0xa2   : > { %v1204_v63 = vrot.slane %v1165_v58, 4  ;;  %v1193_v10 = vperm.slane %v1185_v49, %v2687_v19  ;;  %v1096_v51 = vrot.slane %v1057_v5, 4  ;;  %2162 = vst [vmem:[%s2761_s16 + $0x1c0] sm:$0xff] %v1091_v43  ;;  %v1094_v3 = vrot.slane %v1081_v21, 4  ;;  %v3494_v15 = vld [vmem:[%s2649_s15 + $0x360] sm:$0xff] }
  0xa3   : > { %v1202_v11 = vrot.slane %v1189_v31, 4  ;;  %v1208_v22 = vrot.slane %v1169_v17, 4  ;;  %v1210_v33 = vrot.slane %v3412_v37, 4  ;;  %v1212_v12 = vrot.slane %v3420_v34, 4  ;;  %v3497_v6 = vld [vmem:[%s2649_s15 + $0x3e0] sm:$0xff] }
  0xa4   : > { %v1205_v32 = vsel %vm314_vm0, %v1189_v31, %v1204_v63  ;;  %v1206_v40 = vrot.slane %v1193_v10, 4  ;;  %v1097_v4 = vsel %vm314_vm0, %v1081_v21, %v1096_v51  ;;  %v1095_v59 = vsel %vm314_vm0, %v1094_v3, %v1057_v5 }
  0xa5   : > { %v1203_v36 = vsel %vm314_vm0, %v1202_v11, %v1165_v58  ;;  %2165 = vst [vmem:[%s2761_s16 + $0x1d8] sm:$0xff] %v1205_v32  ;;  %v1209_v42 = vsel %vm314_vm0, %v1193_v10, %v1208_v22  ;;  %v1211_v44 = vsel %vm314_vm0, %v1210_v33, %v3420_v34  ;;  %v1222_v26 = vrot.slane %v3428_v2, 4 }
  0xa6   : > { %2163 = vst [vmem:[%s2761_s16 + $0x1c8] sm:$0xff] %v1203_v36  ;;  %v1207_v53 = vsel %vm314_vm0, %v1206_v40, %v1169_v17  ;;  %v1217_v38 = vperm.slane %v1211_v44, %v2664_v7  ;;  %v1224_v41 = vrot.slane %v3425_v0, 4  ;;  %v1234_v57 = vrot.slane %v3441_v56, 4 }
  0xa7   : > { %2166 = vst [vmem:[%s2761_s16 + $0x1e0] sm:$0xff] %v1095_v59  ;;  %v1236_v62 = vrot.slane %v3432_v29, 4  ;;  %v1246_v18 = vrot.slane %v3444_v35, 4  ;;  %v1248_v25 = vrot.slane %v3438_v13, 4  ;;  %v1223_v16 = vsel %vm314_vm0, %v1222_v26, %v3425_v0 }
  0xa8   : > { %2167 = vst [vmem:[%s2761_s16 + $0x1e8] sm:$0xff] %v1207_v53  ;;  %v1322_v30 = vrot.slane %v3457_v8, 4  ;;  %v1324_v9 = vrot.slane %v3454_v46, 4  ;;  %v1334_v61 = vrot.slane %v3460_v24, 4  ;;  %v1229_v48 = vperm.slane %v1223_v16, %v2664_v7 }
  0xa9   : > { %2168 = vst [vmem:[%s2761_s16 + $0x1f0] sm:$0xff] %v1097_v4  ;;  %v1235_v52 = vsel %vm314_vm0, %v1234_v57, %v3432_v29  ;;  %v1247_v23 = vsel %vm314_vm0, %v1246_v18, %v3438_v13  ;;  %v1336_v47 = vrot.slane %v3468_v20, 4  ;;  %v1346_v58 = vrot.slane %v3479_v28, 4 }
  0xaa   : > { %2169 = vst [vmem:[%s2761_s16 + $0x1f8] sm:$0xff] %v1209_v42  ;;  %v1241_v50 = vperm.slane %v1235_v52, %v2664_v7  ;;  %v1253_v55 = vperm.slane %v1247_v23, %v2664_v7  ;;  %v1323_v54 = vsel %vm314_vm0, %v1322_v30, %v3454_v46  ;;  %v1335_v5 = vsel %vm314_vm0, %v1334_v61, %v3468_v20 }
  0xab   : > { %v1258_v14 = vrot.slane %v1229_v48, 4  ;;  %v1329_v27 = vperm.slane %v1323_v54, %v2664_v7  ;;  %v1341_v39 = vperm.slane %v1335_v5, %v2664_v7  ;;  %v1348_v1 = vrot.slane %v3491_v45, 4 }
  0xac   : > { %v1282_v60 = vrot.slane %v1253_v55, 4  ;;  %v1358_v31 = vrot.slane %v3497_v6, 4  ;;  %v1360_v21 = vrot.slane %v3494_v15, 4  ;;  %v1347_v49 = vsel %vm314_vm0, %v1346_v58, %v3491_v45 }
  0xad   : > { %v1259_v17 = vsel %vm314_vm0, %v1258_v14, %v1217_v38  ;;  %v1370_v43 = vrot.slane %v1341_v39, 4  ;;  %v1260_v63 = vrot.slane %v1217_v38, 4  ;;  %v1353_v11 = vperm.slane %v1347_v49, %v2664_v7 }
  0xae   : > { %v1265_v10 = vperm.slane %v1259_v17, %v2687_v19  ;;  %v1283_v51 = vsel %vm314_vm0, %v1282_v60, %v1241_v50  ;;  %v1359_v3 = vsel %vm314_vm0, %v1358_v31, %v3494_v15  ;;  %v1284_v42 = vrot.slane %v1241_v50, 4 }
  0xaf   : > { %v1289_v22 = vperm.slane %v1283_v51, %v2687_v19  ;;  %v1365_v33 = vperm.slane %v1359_v3, %v2664_v7  ;;  %v1371_v32 = vsel %vm314_vm0, %v1370_v43, %v1329_v27  ;;  %v1261_v40 = vsel %vm314_vm0, %v1229_v48, %v1260_v63 }
  0xb0   : > { %v1377_v4 = vperm.slane %v1371_v32, %v2687_v19  ;;  %v1308_v36 = vrot.slane %v1265_v10, 4  ;;  %v1269_v59 = vperm.slane %v1261_v40, %v2687_v19  ;;  %v1372_v38 = vrot.slane %v1329_v27, 4 }
  0xb1   : > { %v1306_v44 = vrot.slane %v1289_v22, 4  ;;  %v1394_v53 = vrot.slane %v1365_v33, 4  ;;  %v1396_v26 = vrot.slane %v1353_v11, 4  ;;  %v1285_v16 = vsel %vm314_vm0, %v1253_v55, %v1284_v42 }
  0xb2   : > { %v1309_v57 = vsel %vm314_vm0, %v1289_v22, %v1308_v36  ;;  %v1420_v18 = vrot.slane %v1377_v4, 4  ;;  %v1312_v30 = vrot.slane %v1269_v59, 4  ;;  %v1293_v52 = vperm.slane %v1285_v16, %v2687_v19 }
  0xb3   : > { %v1307_v61 = vsel %vm314_vm0, %v1306_v44, %v1265_v10  ;;  %v1395_v48 = vsel %vm314_vm0, %v1394_v53, %v1353_v11  ;;  %2172 = vst [vmem:[%s2761_s16 + $0x210] sm:$0xff] %v1309_v57  ;;  %v1373_v23 = vsel %vm314_vm0, %v1341_v39, %v1372_v38  ;;  %v1397_v5 = vsel %vm314_vm0, %v1365_v33, %v1396_v26  ;;  %v3604_v38 = vld [vmem:[%s2649_s15 + $0xa8] sm:$0xff] }
  0xb4   : > { %2170 = vst [vmem:[%s2761_s16 + $0x200] sm:$0xff] %v1307_v61  ;;  %v1401_v50 = vperm.slane %v1395_v48, %v2687_v19  ;;  %v1381_v54 = vperm.slane %v1373_v23, %v2687_v19  ;;  %v1213_v55 = vsel %vm314_vm0, %v3412_v37, %v1212_v12  ;;  %v1310_v14 = vrot.slane %v1293_v52, 4 }
  0xb5   : > { %v1405_v27 = vperm.slane %v1397_v5, %v2687_v19  ;;  %v1313_v58 = vsel %vm314_vm0, %v1293_v52, %v1312_v30  ;;  %v1221_v39 = vperm.slane %v1213_v55, %v2664_v7  ;;  %v1225_v34 = vsel %vm314_vm0, %v3428_v2, %v1224_v41  ;;  %v3612_v30 = vld [vmem:[%s2649_s15 + $0x28] sm:$0xff] }
  0xb6   : > { %v1418_v60 = vrot.slane %v1401_v50, 4  ;;  %v1421_v31 = vsel %vm314_vm0, %v1401_v50, %v1420_v18  ;;  %2176 = vst [vmem:[%s2761_s16 + $0x230] sm:$0xff] %v1313_v58  ;;  %v1424_v17 = vrot.slane %v1381_v54, 4  ;;  %v1311_v37 = vsel %vm314_vm0, %v1310_v14, %v1269_v59  ;;  %v3617_v50 = vld [vmem:[%s2649_s15 + $0x68] sm:$0xff] }
  0xb7   : > { %2173 = vst [vmem:[%s2761_s16 + $0x218] sm:$0xff] %v1421_v31  ;;  %v1422_v12 = vrot.slane %v1405_v27, 4  ;;  %v1233_v49 = vperm.slane %v1225_v34, %v2664_v7  ;;  %v1237_v43 = vsel %vm314_vm0, %v3441_v56, %v1236_v62  ;;  %v1249_v41 = vsel %vm314_vm0, %v3444_v35, %v1248_v25  ;;  %v3633_v34 = vld [vmem:[%s2649_s15 + $0x1a8] sm:$0xff] }
  0xb8   : > { %v1419_v63 = vsel %vm314_vm0, %v1418_v60, %v1377_v4  ;;  %2174 = vst [vmem:[%s2761_s16 + $0x220] sm:$0xff] %v1311_v37  ;;  %v1425_v0 = vsel %vm314_vm0, %v1405_v27, %v1424_v17  ;;  %v1245_v2 = vperm.slane %v1237_v43, %v2664_v7  ;;  %v1257_v29 = vperm.slane %v1249_v41, %v2664_v7  ;;  %v3624_v27 = vld [vmem:[%s2649_s15 + $0x128] sm:$0xff] }
  0xb9   : > { %2171 = vst [vmem:[%s2761_s16 + $0x208] sm:$0xff] %v1419_v63  ;;  %v1423_v10 = vsel %vm314_vm0, %v1422_v12, %v1381_v54  ;;  %v1270_v51 = vrot.slane %v1233_v49, 4  ;;  %v1325_v56 = vsel %vm314_vm0, %v3457_v8, %v1324_v9  ;;  %v1337_v13 = vsel %vm314_vm0, %v3460_v24, %v1336_v47  ;;  %v3620_v54 = vld [vmem:[%s2649_s15 + $0xe8] sm:$0xff] }
  0xba   : > { %2175 = vst [vmem:[%s2761_s16 + $0x228] sm:$0xff] %v1423_v10  ;;  %v1333_v62 = vperm.slane %v1325_v56, %v2664_v7  ;;  %v1349_v35 = vsel %vm314_vm0, %v3479_v28, %v1348_v1  ;;  %v1361_v46 = vsel %vm314_vm0, %v3497_v6, %v1360_v21  ;;  %v1294_v25 = vrot.slane %v1257_v29, 4  ;;  %v3630_v17 = vld [vmem:[%s2649_s15 + $0x168] sm:$0xff] }
  0xbb   : > { %2177 = vst [vmem:[%s2761_s16 + $0x238] sm:$0xff] %v1425_v0  ;;  %v1271_v8 = vsel %vm314_vm0, %v1270_v51, %v1221_v39  ;;  %v1345_v9 = vperm.slane %v1337_v13, %v2664_v7  ;;  %v1357_v20 = vperm.slane %v1349_v35, %v2664_v7  ;;  %v1369_v45 = vperm.slane %v1361_v46, %v2664_v7  ;;  %v3636_v37 = vld [vmem:[%s2649_s15 + $0x1e8] sm:$0xff] }
  0xbc   : > { %v1277_v24 = vperm.slane %v1271_v8, %v2687_v19  ;;  %v1272_v47 = vrot.slane %v1221_v39, 4  ;;  %v1296_v11 = vrot.slane %v1245_v2, 4  ;;  %v1295_v28 = vsel %vm314_vm0, %v1294_v25, %v1245_v2  ;;  %v3646_v2 = vld [vmem:[%s2649_s15 + $0x228] sm:$0xff] }
  0xbd   : > { %v1382_v15 = vrot.slane %v1345_v9, 4  ;;  %v1384_v1 = vrot.slane %v1333_v62, 4  ;;  %v1408_v6 = vrot.slane %v1357_v20, 4  ;;  %v1301_v21 = vperm.slane %v1295_v28, %v2687_v19  ;;  %v3649_v41 = vld [vmem:[%s2649_s15 + $0x2a8] sm:$0xff] }
  0xbe   : > { %v1406_v3 = vrot.slane %v1369_v45, 4  ;;  %v1316_v22 = vrot.slane %v1277_v24, 4  ;;  %v1273_v33 = vsel %vm314_vm0, %v1233_v49, %v1272_v47  ;;  %v1297_v4 = vsel %vm314_vm0, %v1257_v29, %v1296_v11  ;;  %v3652_v10 = vld [vmem:[%s2649_s15 + $0x2e8] sm:$0xff] }
  0xbf   : > { %v1383_v32 = vsel %vm314_vm0, %v1382_v15, %v1333_v62  ;;  %v1281_v40 = vperm.slane %v1273_v33, %v2687_v19  ;;  %v1385_v36 = vsel %vm314_vm0, %v1345_v9, %v1384_v1  ;;  %v1314_v59 = vrot.slane %v1301_v21, 4  ;;  %v3660_v13 = vld [vmem:[%s2649_s15 + $0x268] sm:$0xff] }
  0xc0   : > { %v1389_v42 = vperm.slane %v1383_v32, %v2687_v19  ;;  %v1407_v44 = vsel %vm314_vm0, %v1406_v3, %v1357_v20  ;;  %v1317_v53 = vsel %vm314_vm0, %v1301_v21, %v1316_v22  ;;  %v1305_v57 = vperm.slane %v1297_v4, %v2687_v19  ;;  %v3671_v20 = vld [vmem:[%s2649_s15 + $0x3a8] sm:$0xff] }
  0xc1   : > { %v1413_v26 = vperm.slane %v1407_v44, %v2687_v19  ;;  %2180 = vst [vmem:[%s2761_s16 + $0x250] sm:$0xff] %v1317_v53  ;;  %v1393_v18 = vperm.slane %v1385_v36, %v2687_v19  ;;  %v1409_v16 = vsel %vm314_vm0, %v1369_v45, %v1408_v6  ;;  %v1315_v61 = vsel %vm314_vm0, %v1314_v59, %v1277_v24  ;;  %v3683_v1 = vld [vmem:[%s2649_s15 + $0x328] sm:$0xff] }
  0xc2   : > { %v1428_v48 = vrot.slane %v1389_v42, 4  ;;  %v1417_v52 = vperm.slane %v1409_v16, %v2687_v19  ;;  %v1320_v23 = vrot.slane %v1281_v40, 4  ;;  %2178 = vst [vmem:[%s2761_s16 + $0x240] sm:$0xff] %v1315_v61  ;;  %v1318_v55 = vrot.slane %v1305_v57, 4  ;;  %v3686_v6 = vld [vmem:[%s2649_s15 + $0x368] sm:$0xff] }
  0xc3   : > { %v1426_v5 = vrot.slane %v1413_v26, 4  ;;  %v1432_v14 = vrot.slane %v1393_v18, 4  ;;  %v1434_v58 = vrot.slane %v3604_v38, 4  ;;  %v1436_v12 = vrot.slane %v3612_v30, 4  ;;  %v3689_v21 = vld [vmem:[%s2649_s15 + $0x3e8] sm:$0xff] }
  0xc4   : > { %v1429_v39 = vsel %vm314_vm0, %v1413_v26, %v1428_v48  ;;  %v1430_v60 = vrot.slane %v1417_v52, 4  ;;  %v1321_v31 = vsel %vm314_vm0, %v1305_v57, %v1320_v23  ;;  %v1319_v43 = vsel %vm314_vm0, %v1318_v55, %v1281_v40 }
  0xc5   : > { %v1427_v49 = vsel %vm314_vm0, %v1426_v5, %v1389_v42  ;;  %2181 = vst [vmem:[%s2761_s16 + $0x258] sm:$0xff] %v1429_v39  ;;  %v1433_v63 = vsel %vm314_vm0, %v1417_v52, %v1432_v14  ;;  %v1435_v0 = vsel %vm314_vm0, %v1434_v58, %v3612_v30  ;;  %v1446_v56 = vrot.slane %v3620_v54, 4 }
  0xc6   : > { %2179 = vst [vmem:[%s2761_s16 + $0x248] sm:$0xff] %v1427_v49  ;;  %v1431_v29 = vsel %vm314_vm0, %v1430_v60, %v1393_v18  ;;  %v1441_v51 = vperm.slane %v1435_v0, %v2664_v7  ;;  %v1448_v62 = vrot.slane %v3617_v50, 4  ;;  %v1458_v35 = vrot.slane %v3633_v34, 4 }
  0xc7   : > { %2182 = vst [vmem:[%s2761_s16 + $0x260] sm:$0xff] %v1319_v43  ;;  %v1460_v46 = vrot.slane %v3624_v27, 4  ;;  %v1470_v8 = vrot.slane %v3636_v37, 4  ;;  %v1472_v25 = vrot.slane %v3630_v17, 4  ;;  %v1447_v9 = vsel %vm314_vm0, %v1446_v56, %v3617_v50 }
  0xc8   : > { %2183 = vst [vmem:[%s2761_s16 + $0x268] sm:$0xff] %v1431_v29  ;;  %v1546_v24 = vrot.slane %v3649_v41, 4  ;;  %v1548_v45 = vrot.slane %v3646_v2, 4  ;;  %v1558_v47 = vrot.slane %v3652_v10, 4  ;;  %v1453_v11 = vperm.slane %v1447_v9, %v2664_v7 }
  0xc9   : > { %2184 = vst [vmem:[%s2761_s16 + $0x270] sm:$0xff] %v1321_v31  ;;  %v1459_v28 = vsel %vm314_vm0, %v1458_v35, %v3624_v27  ;;  %v1471_v15 = vsel %vm314_vm0, %v1470_v8, %v3630_v17  ;;  %v1560_v3 = vrot.slane %v3660_v13, 4  ;;  %v1570_v42 = vrot.slane %v3671_v20, 4 }
  0xca   : > { %2185 = vst [vmem:[%s2761_s16 + $0x278] sm:$0xff] %v1433_v63  ;;  %v1465_v22 = vperm.slane %v1459_v28, %v2664_v7  ;;  %v1477_v33 = vperm.slane %v1471_v15, %v2664_v7  ;;  %v1547_v32 = vsel %vm314_vm0, %v1546_v24, %v3646_v2  ;;  %v1559_v40 = vsel %vm314_vm0, %v1558_v47, %v3660_v13 }
  0xcb   : > { %v1482_v4 = vrot.slane %v1453_v11, 4  ;;  %v1553_v36 = vperm.slane %v1547_v32, %v2664_v7  ;;  %v1565_v59 = vperm.slane %v1559_v40, %v2664_v7  ;;  %v1572_v53 = vrot.slane %v3683_v1, 4 }
  0xcc   : > { %v1506_v44 = vrot.slane %v1477_v33, 4  ;;  %v1582_v26 = vrot.slane %v3689_v21, 4  ;;  %v1584_v57 = vrot.slane %v3686_v6, 4  ;;  %v1571_v16 = vsel %vm314_vm0, %v1570_v42, %v3683_v1 }
  0xcd   : > { %v1483_v18 = vsel %vm314_vm0, %v1482_v4, %v1441_v51  ;;  %v1594_v61 = vrot.slane %v1565_v59, 4  ;;  %v1484_v48 = vrot.slane %v1441_v51, 4  ;;  %v1577_v5 = vperm.slane %v1571_v16, %v2664_v7 }
  0xce   : > { %v1489_v52 = vperm.slane %v1483_v18, %v2687_v19  ;;  %v1507_v23 = vsel %vm314_vm0, %v1506_v44, %v1465_v22  ;;  %v1583_v55 = vsel %vm314_vm0, %v1582_v26, %v3686_v6  ;;  %v1508_v63 = vrot.slane %v1465_v22, 4 }
  0xcf   : > { %v1513_v14 = vperm.slane %v1507_v23, %v2687_v19  ;;  %v1589_v58 = vperm.slane %v1583_v55, %v2664_v7  ;;  %v1595_v39 = vsel %vm314_vm0, %v1594_v61, %v1553_v36  ;;  %v1485_v60 = vsel %vm314_vm0, %v1453_v11, %v1484_v48 }
  0xd0   : > { %v1601_v31 = vperm.slane %v1595_v39, %v2687_v19  ;;  %v1532_v49 = vrot.slane %v1489_v52, 4  ;;  %v1493_v43 = vperm.slane %v1485_v60, %v2687_v19  ;;  %v1596_v51 = vrot.slane %v1553_v36, 4 }
  0xd1   : > { %v1530_v0 = vrot.slane %v1513_v14, 4  ;;  %v1618_v29 = vrot.slane %v1589_v58, 4  ;;  %v1620_v56 = vrot.slane %v1577_v5, 4  ;;  %v1509_v9 = vsel %vm314_vm0, %v1477_v33, %v1508_v63 }
  0xd2   : > { %v1533_v35 = vsel %vm314_vm0, %v1513_v14, %v1532_v49  ;;  %v1644_v8 = vrot.slane %v1601_v31, 4  ;;  %v1536_v24 = vrot.slane %v1493_v43, 4  ;;  %v1517_v28 = vperm.slane %v1509_v9, %v2687_v19 }
  0xd3   : > { %v1531_v47 = vsel %vm314_vm0, %v1530_v0, %v1489_v52  ;;  %v1619_v11 = vsel %vm314_vm0, %v1618_v29, %v1577_v5  ;;  %2188 = vst [vmem:[%s2761_s16 + $0x290] sm:$0xff] %v1533_v35  ;;  %v1597_v15 = vsel %vm314_vm0, %v1565_v59, %v1596_v51  ;;  %v1621_v40 = vsel %vm314_vm0, %v1589_v58, %v1620_v56  ;;  %v3796_v51 = vld [vmem:[%s2649_s15 + $0xb0] sm:$0xff] }
  0xd4   : > { %2186 = vst [vmem:[%s2761_s16 + $0x280] sm:$0xff] %v1531_v47  ;;  %v1625_v22 = vperm.slane %v1619_v11, %v2687_v19  ;;  %v1605_v32 = vperm.slane %v1597_v15, %v2687_v19  ;;  %v1437_v33 = vsel %vm314_vm0, %v3604_v38, %v1436_v12  ;;  %v1534_v4 = vrot.slane %v1517_v28, 4 }
  0xd5   : > { %v1629_v36 = vperm.slane %v1621_v40, %v2687_v19  ;;  %v1537_v42 = vsel %vm314_vm0, %v1517_v28, %v1536_v24  ;;  %v1445_v59 = vperm.slane %v1437_v33, %v2664_v7  ;;  %v1449_v30 = vsel %vm314_vm0, %v3620_v54, %v1448_v62  ;;  %v3804_v24 = vld [vmem:[%s2649_s15 + $0x30] sm:$0xff] }
  0xd6   : > { %v1642_v44 = vrot.slane %v1625_v22, 4  ;;  %v1645_v26 = vsel %vm314_vm0, %v1625_v22, %v1644_v8  ;;  %2192 = vst [vmem:[%s2761_s16 + $0x2b0] sm:$0xff] %v1537_v42  ;;  %v1648_v18 = vrot.slane %v1605_v32, 4  ;;  %v1535_v38 = vsel %vm314_vm0, %v1534_v4, %v1493_v43  ;;  %v3809_v22 = vld [vmem:[%s2649_s15 + $0x70] sm:$0xff] }
  0xd7   : > { %2189 = vst [vmem:[%s2761_s16 + $0x298] sm:$0xff] %v1645_v26  ;;  %v1646_v12 = vrot.slane %v1629_v36, 4  ;;  %v1457_v16 = vperm.slane %v1449_v30, %v2664_v7  ;;  %v1461_v61 = vsel %vm314_vm0, %v3633_v34, %v1460_v46  ;;  %v1473_v62 = vsel %vm314_vm0, %v3636_v37, %v1472_v25  ;;  %v3825_v30 = vld [vmem:[%s2649_s15 + $0x1b0] sm:$0xff] }
  0xd8   : > { %v1643_v48 = vsel %vm314_vm0, %v1642_v44, %v1601_v31  ;;  %2190 = vst [vmem:[%s2761_s16 + $0x2a0] sm:$0xff] %v1535_v38  ;;  %v1649_v50 = vsel %vm314_vm0, %v1629_v36, %v1648_v18  ;;  %v1469_v54 = vperm.slane %v1461_v61, %v2664_v7  ;;  %v1481_v27 = vperm.slane %v1473_v62, %v2664_v7  ;;  %v3816_v36 = vld [vmem:[%s2649_s15 + $0x130] sm:$0xff] }
  0xd9   : > { %2187 = vst [vmem:[%s2761_s16 + $0x288] sm:$0xff] %v1643_v48  ;;  %v1647_v52 = vsel %vm314_vm0, %v1646_v12, %v1605_v32  ;;  %v1494_v23 = vrot.slane %v1457_v16, 4  ;;  %v1549_v34 = vsel %vm314_vm0, %v3649_v41, %v1548_v45  ;;  %v1561_v17 = vsel %vm314_vm0, %v3652_v10, %v1560_v3  ;;  %v3812_v32 = vld [vmem:[%s2649_s15 + $0xf0] sm:$0xff] }
  0xda   : > { %2191 = vst [vmem:[%s2761_s16 + $0x2a8] sm:$0xff] %v1647_v52  ;;  %v1557_v46 = vperm.slane %v1549_v34, %v2664_v7  ;;  %v1573_v37 = vsel %vm314_vm0, %v3671_v20, %v1572_v53  ;;  %v1585_v2 = vsel %vm314_vm0, %v3689_v21, %v1584_v57  ;;  %v1518_v25 = vrot.slane %v1481_v27, 4  ;;  %v3822_v18 = vld [vmem:[%s2649_s15 + $0x170] sm:$0xff] }
  0xdb   : > { %2193 = vst [vmem:[%s2761_s16 + $0x2b8] sm:$0xff] %v1649_v50  ;;  %v1495_v41 = vsel %vm314_vm0, %v1494_v23, %v1445_v59  ;;  %v1569_v45 = vperm.slane %v1561_v17, %v2664_v7  ;;  %v1581_v13 = vperm.slane %v1573_v37, %v2664_v7  ;;  %v1593_v1 = vperm.slane %v1585_v2, %v2664_v7  ;;  %v3828_v38 = vld [vmem:[%s2649_s15 + $0x1f0] sm:$0xff] }
  0xdc   : > { %v1501_v10 = vperm.slane %v1495_v41, %v2687_v19  ;;  %v1496_v3 = vrot.slane %v1445_v59, 4  ;;  %v1520_v5 = vrot.slane %v1469_v54, 4  ;;  %v1519_v20 = vsel %vm314_vm0, %v1518_v25, %v1469_v54  ;;  %v3838_v54 = vld [vmem:[%s2649_s15 + $0x230] sm:$0xff] }
  0xdd   : > { %v1606_v6 = vrot.slane %v1569_v45, 4  ;;  %v1608_v53 = vrot.slane %v1557_v46, 4  ;;  %v1632_v21 = vrot.slane %v1581_v13, 4  ;;  %v1525_v57 = vperm.slane %v1519_v20, %v2687_v19  ;;  %v3841_v62 = vld [vmem:[%s2649_s15 + $0x2b0] sm:$0xff] }
  0xde   : > { %v1630_v55 = vrot.slane %v1593_v1, 4  ;;  %v1540_v14 = vrot.slane %v1501_v10, 4  ;;  %v1497_v58 = vsel %vm314_vm0, %v1457_v16, %v1496_v3  ;;  %v1521_v31 = vsel %vm314_vm0, %v1481_v27, %v1520_v5  ;;  %v3844_v52 = vld [vmem:[%s2649_s15 + $0x2f0] sm:$0xff] }
  0xdf   : > { %v1607_v39 = vsel %vm314_vm0, %v1606_v6, %v1557_v46  ;;  %v1505_v60 = vperm.slane %v1497_v58, %v2687_v19  ;;  %v1609_v49 = vsel %vm314_vm0, %v1569_v45, %v1608_v53  ;;  %v1538_v43 = vrot.slane %v1525_v57, 4  ;;  %v3852_v17 = vld [vmem:[%s2649_s15 + $0x270] sm:$0xff] }
  0xe0   : > { %v1613_v63 = vperm.slane %v1607_v39, %v2687_v19  ;;  %v1631_v0 = vsel %vm314_vm0, %v1630_v55, %v1581_v13  ;;  %v1541_v29 = vsel %vm314_vm0, %v1525_v57, %v1540_v14  ;;  %v1529_v35 = vperm.slane %v1521_v31, %v2687_v19  ;;  %v3863_v13 = vld [vmem:[%s2649_s15 + $0x3b0] sm:$0xff] }
  0xe1   : > { %v1637_v56 = vperm.slane %v1631_v0, %v2687_v19  ;;  %2196 = vst [vmem:[%s2761_s16 + $0x2d0] sm:$0xff] %v1541_v29  ;;  %v1617_v8 = vperm.slane %v1609_v49, %v2687_v19  ;;  %v1633_v9 = vsel %vm314_vm0, %v1593_v1, %v1632_v21  ;;  %v1539_v47 = vsel %vm314_vm0, %v1538_v43, %v1501_v10  ;;  %v3875_v53 = vld [vmem:[%s2649_s15 + $0x330] sm:$0xff] }
  0xe2   : > { %v1652_v11 = vrot.slane %v1613_v63, 4  ;;  %v1641_v28 = vperm.slane %v1633_v9, %v2687_v19  ;;  %v1544_v15 = vrot.slane %v1505_v60, 4  ;;  %2194 = vst [vmem:[%s2761_s16 + $0x2c0] sm:$0xff] %v1539_v47  ;;  %v1542_v33 = vrot.slane %v1529_v35, 4  ;;  %v3878_v21 = vld [vmem:[%s2649_s15 + $0x370] sm:$0xff] }
  0xe3   : > { %v1650_v40 = vrot.slane %v1637_v56, 4  ;;  %v1656_v4 = vrot.slane %v1617_v8, 4  ;;  %v1658_v42 = vrot.slane %v3796_v51, 4  ;;  %v1660_v12 = vrot.slane %v3804_v24, 4  ;;  %v3881_v57 = vld [vmem:[%s2649_s15 + $0x3f0] sm:$0xff] }
  0xe4   : > { %v1653_v59 = vsel %vm314_vm0, %v1637_v56, %v1652_v11  ;;  %v1654_v44 = vrot.slane %v1641_v28, 4  ;;  %v1545_v26 = vsel %vm314_vm0, %v1529_v35, %v1544_v15  ;;  %v1543_v61 = vsel %vm314_vm0, %v1542_v33, %v1505_v60 }
  0xe5   : > { %v1651_v16 = vsel %vm314_vm0, %v1650_v40, %v1613_v63  ;;  %2197 = vst [vmem:[%s2761_s16 + $0x2d8] sm:$0xff] %v1653_v59  ;;  %v1657_v48 = vsel %vm314_vm0, %v1641_v28, %v1656_v4  ;;  %v1659_v50 = vsel %vm314_vm0, %v1658_v42, %v3804_v24  ;;  %v1670_v34 = vrot.slane %v3812_v32, 4 }
  0xe6   : > { %2195 = vst [vmem:[%s2761_s16 + $0x2c8] sm:$0xff] %v1651_v16  ;;  %v1655_v27 = vsel %vm314_vm0, %v1654_v44, %v1617_v8  ;;  %v1665_v23 = vperm.slane %v1659_v50, %v2664_v7  ;;  %v1672_v46 = vrot.slane %v3809_v22, 4  ;;  %v1682_v37 = vrot.slane %v3825_v30, 4 }
  0xe7   : > { %2198 = vst [vmem:[%s2761_s16 + $0x2e0] sm:$0xff] %v1543_v61  ;;  %v1684_v2 = vrot.slane %v3816_v36, 4  ;;  %v1694_v41 = vrot.slane %v3828_v38, 4  ;;  %v1696_v25 = vrot.slane %v3822_v18, 4  ;;  %v1671_v45 = vsel %vm314_vm0, %v1670_v34, %v3809_v22 }
  0xe8   : > { %2199 = vst [vmem:[%s2761_s16 + $0x2e8] sm:$0xff] %v1655_v27  ;;  %v1770_v10 = vrot.slane %v3841_v62, 4  ;;  %v1772_v1 = vrot.slane %v3838_v54, 4  ;;  %v1782_v3 = vrot.slane %v3844_v52, 4  ;;  %v1677_v5 = vperm.slane %v1671_v45, %v2664_v7 }
  0xe9   : > { %2200 = vst [vmem:[%s2761_s16 + $0x2f0] sm:$0xff] %v1545_v26  ;;  %v1683_v20 = vsel %vm314_vm0, %v1682_v37, %v3816_v36  ;;  %v1695_v6 = vsel %vm314_vm0, %v1694_v41, %v3822_v18  ;;  %v1784_v55 = vrot.slane %v3852_v17, 4  ;;  %v1794_v63 = vrot.slane %v3863_v13, 4 }
  0xea   : > { %2201 = vst [vmem:[%s2761_s16 + $0x2f8] sm:$0xff] %v1657_v48  ;;  %v1689_v14 = vperm.slane %v1683_v20, %v2664_v7  ;;  %v1701_v58 = vperm.slane %v1695_v6, %v2664_v7  ;;  %v1771_v39 = vsel %vm314_vm0, %v1770_v10, %v3838_v54  ;;  %v1783_v60 = vsel %vm314_vm0, %v1782_v3, %v3852_v17 }
  0xeb   : > { %v1706_v31 = vrot.slane %v1677_v5, 4  ;;  %v1777_v49 = vperm.slane %v1771_v39, %v2664_v7  ;;  %v1789_v43 = vperm.slane %v1783_v60, %v2664_v7  ;;  %v1796_v29 = vrot.slane %v3875_v53, 4 }
  0xec   : > { %v1730_v0 = vrot.slane %v1701_v58, 4  ;;  %v1806_v56 = vrot.slane %v3881_v57, 4  ;;  %v1808_v35 = vrot.slane %v3878_v21, 4  ;;  %v1795_v9 = vsel %vm314_vm0, %v1794_v63, %v3875_v53 }
  0xed   : > { %v1707_v8 = vsel %vm314_vm0, %v1706_v31, %v1665_v23  ;;  %v1818_v47 = vrot.slane %v1789_v43, 4  ;;  %v1708_v11 = vrot.slane %v1665_v23, 4  ;;  %v1801_v40 = vperm.slane %v1795_v9, %v2664_v7 }
  0xee   : > { %v1713_v28 = vperm.slane %v1707_v8, %v2687_v19  ;;  %v1731_v15 = vsel %vm314_vm0, %v1730_v0, %v1689_v14  ;;  %v1807_v33 = vsel %vm314_vm0, %v1806_v56, %v3878_v21  ;;  %v1732_v48 = vrot.slane %v1689_v14, 4 }
  0xef   : > { %v1737_v4 = vperm.slane %v1731_v15, %v2687_v19  ;;  %v1813_v42 = vperm.slane %v1807_v33, %v2664_v7  ;;  %v1819_v59 = vsel %vm314_vm0, %v1818_v47, %v1777_v49  ;;  %v1709_v44 = vsel %vm314_vm0, %v1677_v5, %v1708_v11 }
  0xf0   : > { %v1825_v26 = vperm.slane %v1819_v59, %v2687_v19  ;;  %v1756_v16 = vrot.slane %v1713_v28, 4  ;;  %v1717_v61 = vperm.slane %v1709_v44, %v2687_v19  ;;  %v1820_v23 = vrot.slane %v1777_v49, 4 }
  0xf1   : > { %v1754_v50 = vrot.slane %v1737_v4, 4  ;;  %v1842_v27 = vrot.slane %v1813_v42, 4  ;;  %v1844_v34 = vrot.slane %v1801_v40, 4  ;;  %v1733_v45 = vsel %vm314_vm0, %v1701_v58, %v1732_v48 }
  0xf2   : > { %v1757_v37 = vsel %vm314_vm0, %v1737_v4, %v1756_v16  ;;  %v1868_v41 = vrot.slane %v1825_v26, 4  ;;  %v1760_v10 = vrot.slane %v1717_v61, 4  ;;  %v1741_v20 = vperm.slane %v1733_v45, %v2687_v19 }
  0xf3   : > { %v1755_v3 = vsel %vm314_vm0, %v1754_v50, %v1713_v28  ;;  %v1843_v5 = vsel %vm314_vm0, %v1842_v27, %v1801_v40  ;;  %2204 = vst [vmem:[%s2761_s16 + $0x310] sm:$0xff] %v1757_v37  ;;  %v1821_v6 = vsel %vm314_vm0, %v1789_v43, %v1820_v23  ;;  %v1845_v60 = vsel %vm314_vm0, %v1813_v42, %v1844_v34  ;;  %v3988_v23 = vld [vmem:[%s2649_s15 + $0xb8] sm:$0xff] }
  0xf4   : > { %2202 = vst [vmem:[%s2761_s16 + $0x300] sm:$0xff] %v1755_v3  ;;  %v1849_v14 = vperm.slane %v1843_v5, %v2687_v19  ;;  %v1829_v39 = vperm.slane %v1821_v6, %v2687_v19  ;;  %v1661_v58 = vsel %vm314_vm0, %v3796_v51, %v1660_v12  ;;  %v1758_v31 = vrot.slane %v1741_v20, 4 }
  0xf5   : > { %v1853_v49 = vperm.slane %v1845_v60, %v2687_v19  ;;  %v1761_v63 = vsel %vm314_vm0, %v1741_v20, %v1760_v10  ;;  %v1669_v43 = vperm.slane %v1661_v58, %v2664_v7  ;;  %v1673_v24 = vsel %vm314_vm0, %v3812_v32, %v1672_v46  ;;  %v3996_v10 = vld [vmem:[%s2649_s15 + $0x38] sm:$0xff] }
  0xf6   : > { %v1866_v0 = vrot.slane %v1849_v14, 4  ;;  %v1869_v56 = vsel %vm314_vm0, %v1849_v14, %v1868_v41  ;;  %2208 = vst [vmem:[%s2761_s16 + $0x330] sm:$0xff] %v1761_v63  ;;  %v1872_v8 = vrot.slane %v1829_v39, 4  ;;  %v1759_v51 = vsel %vm314_vm0, %v1758_v31, %v1717_v61  ;;  %v4001_v14 = vld [vmem:[%s2649_s15 + $0x78] sm:$0xff] }
  0xf7   : > { %2205 = vst [vmem:[%s2761_s16 + $0x318] sm:$0xff] %v1869_v56  ;;  %v1870_v12 = vrot.slane %v1853_v49, 4  ;;  %v1681_v9 = vperm.slane %v1673_v24, %v2664_v7  ;;  %v1685_v47 = vsel %vm314_vm0, %v3825_v30, %v1684_v2  ;;  %v1697_v46 = vsel %vm314_vm0, %v3828_v38, %v1696_v25  ;;  %v4017_v24 = vld [vmem:[%s2649_s15 + $0x1b8] sm:$0xff] }
  0xf8   : > { %v1867_v11 = vsel %vm314_vm0, %v1866_v0, %v1825_v26  ;;  %2206 = vst [vmem:[%s2761_s16 + $0x320] sm:$0xff] %v1759_v51  ;;  %v1873_v22 = vsel %vm314_vm0, %v1853_v49, %v1872_v8  ;;  %v1693_v32 = vperm.slane %v1685_v47, %v2664_v7  ;;  %v1705_v36 = vperm.slane %v1697_v46, %v2664_v7  ;;  %v4008_v49 = vld [vmem:[%s2649_s15 + $0x138] sm:$0xff] }
  0xf9   : > { %2203 = vst [vmem:[%s2761_s16 + $0x308] sm:$0xff] %v1867_v11  ;;  %v1871_v28 = vsel %vm314_vm0, %v1870_v12, %v1829_v39  ;;  %v1718_v15 = vrot.slane %v1681_v9, 4  ;;  %v1773_v30 = vsel %vm314_vm0, %v3841_v62, %v1772_v1  ;;  %v1785_v18 = vsel %vm314_vm0, %v3844_v52, %v1784_v55  ;;  %v4004_v39 = vld [vmem:[%s2649_s15 + $0xf8] sm:$0xff] }
  0xfa   : > { %2207 = vst [vmem:[%s2761_s16 + $0x328] sm:$0xff] %v1871_v28  ;;  %v1781_v2 = vperm.slane %v1773_v30, %v2664_v7  ;;  %v1797_v38 = vsel %vm314_vm0, %v3863_v13, %v1796_v29  ;;  %v1809_v54 = vsel %vm314_vm0, %v3881_v57, %v1808_v35  ;;  %v1742_v25 = vrot.slane %v1705_v36, 4  ;;  %v4014_v8 = vld [vmem:[%s2649_s15 + $0x178] sm:$0xff] }
  0xfb   : > { %2209 = vst [vmem:[%s2761_s16 + $0x338] sm:$0xff] %v1873_v22  ;;  %v1719_v62 = vsel %vm314_vm0, %v1718_v15, %v1669_v43  ;;  %v1793_v1 = vperm.slane %v1785_v18, %v2664_v7  ;;  %v1805_v17 = vperm.slane %v1797_v38, %v2664_v7  ;;  %v1817_v53 = vperm.slane %v1809_v54, %v2664_v7  ;;  %v4020_v51 = vld [vmem:[%s2649_s15 + $0x1f8] sm:$0xff] }
  0xfc   : > { %v1725_v52 = vperm.slane %v1719_v62, %v2687_v19  ;;  %v1720_v55 = vrot.slane %v1669_v43, 4  ;;  %v1744_v40 = vrot.slane %v1693_v32, 4  ;;  %v1743_v13 = vsel %vm314_vm0, %v1742_v25, %v1693_v32  ;;  %v4030_v32 = vld [vmem:[%s2649_s15 + $0x238] sm:$0xff] }
  0xfd   : > { %v1830_v21 = vrot.slane %v1793_v1, 4  ;;  %v1832_v29 = vrot.slane %v1781_v2, 4  ;;  %v1856_v57 = vrot.slane %v1805_v17, 4  ;;  %v1749_v35 = vperm.slane %v1743_v13, %v2687_v19  ;;  %v4033_v46 = vld [vmem:[%s2649_s15 + $0x2b8] sm:$0xff] }
  0xfe   : > { %v1854_v33 = vrot.slane %v1817_v53, 4  ;;  %v1764_v4 = vrot.slane %v1725_v52, 4  ;;  %v1721_v42 = vsel %vm314_vm0, %v1681_v9, %v1720_v55  ;;  %v1745_v26 = vsel %vm314_vm0, %v1705_v36, %v1744_v40  ;;  %v4036_v28 = vld [vmem:[%s2649_s15 + $0x2f8] sm:$0xff] }
  0xff   : > { %v1831_v59 = vsel %vm314_vm0, %v1830_v21, %v1781_v2  ;;  %v1729_v44 = vperm.slane %v1721_v42, %v2687_v19  ;;  %v1833_v16 = vsel %vm314_vm0, %v1793_v1, %v1832_v29  ;;  %v1762_v61 = vrot.slane %v1749_v35, 4  ;;  %v4044_v18 = vld [vmem:[%s2649_s15 + $0x278] sm:$0xff] }
 0x100   : > { %v1837_v48 = vperm.slane %v1831_v59, %v2687_v19  ;;  %v1855_v50 = vsel %vm314_vm0, %v1854_v33, %v1805_v17  ;;  %v1765_v27 = vsel %vm314_vm0, %v1749_v35, %v1764_v4  ;;  %v1753_v37 = vperm.slane %v1745_v26, %v2687_v19  ;;  %v4055_v17 = vld [vmem:[%s2649_s15 + $0x3b8] sm:$0xff] }
 0x101   : > { %v1861_v34 = vperm.slane %v1855_v50, %v2687_v19  ;;  %2212 = vst [vmem:[%s2761_s16 + $0x350] sm:$0xff] %v1765_v27  ;;  %v1841_v41 = vperm.slane %v1833_v16, %v2687_v19  ;;  %v1857_v45 = vsel %vm314_vm0, %v1817_v53, %v1856_v57  ;;  %v1763_v3 = vsel %vm314_vm0, %v1762_v61, %v1725_v52  ;;  %v4067_v29 = vld [vmem:[%s2649_s15 + $0x338] sm:$0xff] }
 0x102   : > { %v1876_v5 = vrot.slane %v1837_v48, 4  ;;  %v1865_v20 = vperm.slane %v1857_v45, %v2687_v19  ;;  %v1768_v6 = vrot.slane %v1729_v44, 4  ;;  %2210 = vst [vmem:[%s2761_s16 + $0x340] sm:$0xff] %v1763_v3  ;;  %v1766_v58 = vrot.slane %v1753_v37, 4  ;;  %v4070_v57 = vld [vmem:[%s2649_s15 + $0x378] sm:$0xff] }
 0x103   : > { %v1874_v60 = vrot.slane %v1861_v34, 4  ;;  %v1880_v31 = vrot.slane %v1841_v41, 4  ;;  %v1882_v63 = vrot.slane %v3988_v23, 4  ;;  %v1884_v12 = vrot.slane %v3996_v10, 4  ;;  %v4073_v35 = vld [vmem:[%s2649_s15 + $0x3f8] sm:$0xff] }
 0x104   : > { %v1877_v43 = vsel %vm314_vm0, %v1861_v34, %v1876_v5  ;;  %v1878_v0 = vrot.slane %v1865_v20, 4  ;;  %v1769_v56 = vsel %vm314_vm0, %v1753_v37, %v1768_v6  ;;  %v1767_v47 = vsel %vm314_vm0, %v1766_v58, %v1729_v44 }
 0x105   : > { %v1875_v9 = vsel %vm314_vm0, %v1874_v60, %v1837_v48  ;;  %2213 = vst [vmem:[%s2761_s16 + $0x358] sm:$0xff] %v1877_v43  ;;  %v1881_v11 = vsel %vm314_vm0, %v1865_v20, %v1880_v31  ;;  %v1883_v22 = vsel %vm314_vm0, %v1882_v63, %v3996_v10  ;;  %v1894_v30 = vrot.slane %v4004_v39, 4 }
 0x106   : > { %2211 = vst [vmem:[%s2761_s16 + $0x348] sm:$0xff] %v1875_v9  ;;  %v1879_v36 = vsel %vm314_vm0, %v1878_v0, %v1841_v41  ;;  %v1889_v15 = vperm.slane %v1883_v22, %v2664_v7  ;;  %v1896_v2 = vrot.slane %v4001_v14, 4  ;;  %v1906_v38 = vrot.slane %v4017_v24, 4 }
 0x107   : > { %2214 = vst [vmem:[%s2761_s16 + $0x360] sm:$0xff] %v1767_v47  ;;  %v1908_v54 = vrot.slane %v4008_v49, 4  ;;  %v1918_v62 = vrot.slane %v4020_v51, 4  ;;  %v1920_v25 = vrot.slane %v4014_v8, 4  ;;  %v1895_v1 = vsel %vm314_vm0, %v1894_v30, %v4001_v14 }
 0x108   : > { %2215 = vst [vmem:[%s2761_s16 + $0x368] sm:$0xff] %v1879_v36  ;;  %v1994_v52 = vrot.slane %v4033_v46, 4  ;;  %v1996_v53 = vrot.slane %v4030_v32, 4  ;;  %v2006_v55 = vrot.slane %v4036_v28, 4  ;;  %v1901_v40 = vperm.slane %v1895_v1, %v2664_v7 }
 0x109   : > { %2216 = vst [vmem:[%s2761_s16 + $0x370] sm:$0xff] %v1769_v56  ;;  %v1907_v13 = vsel %vm314_vm0, %v1906_v38, %v4008_v49  ;;  %v1919_v21 = vsel %vm314_vm0, %v1918_v62, %v4014_v8  ;;  %v2008_v33 = vrot.slane %v4044_v18, 4  ;;  %v2018_v48 = vrot.slane %v4055_v17, 4 }
 0x10a   : > { %2217 = vst [vmem:[%s2761_s16 + $0x378] sm:$0xff] %v1881_v11  ;;  %v1913_v4 = vperm.slane %v1907_v13, %v2664_v7  ;;  %v1925_v42 = vperm.slane %v1919_v21, %v2664_v7  ;;  %v1995_v59 = vsel %vm314_vm0, %v1994_v52, %v4030_v32  ;;  %v2007_v44 = vsel %vm314_vm0, %v2006_v55, %v4044_v18 }
 0x10b   : > { %v1930_v26 = vrot.slane %v1901_v40, 4  ;;  %v2001_v16 = vperm.slane %v1995_v59, %v2664_v7  ;;  %v2013_v61 = vperm.slane %v2007_v44, %v2664_v7  ;;  %v2020_v27 = vrot.slane %v4067_v29, 4 }
 0x10c   : > { %v1954_v50 = vrot.slane %v1925_v42, 4  ;;  %v2030_v34 = vrot.slane %v4073_v35, 4  ;;  %v2032_v37 = vrot.slane %v4070_v57, 4  ;;  %v2019_v45 = vsel %vm314_vm0, %v2018_v48, %v4067_v29 }
 0x10d   : > { %v1931_v41 = vsel %vm314_vm0, %v1930_v26, %v1889_v15  ;;  %v2042_v3 = vrot.slane %v2013_v61, 4  ;;  %v1932_v5 = vrot.slane %v1889_v15, 4  ;;  %v2025_v60 = vperm.slane %v2019_v45, %v2664_v7 }
 0x10e   : > { %v1937_v20 = vperm.slane %v1931_v41, %v2687_v19  ;;  %v1955_v6 = vsel %vm314_vm0, %v1954_v50, %v1913_v4  ;;  %v2031_v58 = vsel %vm314_vm0, %v2030_v34, %v4070_v57  ;;  %v1956_v11 = vrot.slane %v1913_v4, 4 }
 0x10f   : > { %v1961_v31 = vperm.slane %v1955_v6, %v2687_v19  ;;  %v2037_v63 = vperm.slane %v2031_v58, %v2664_v7  ;;  %v2043_v43 = vsel %vm314_vm0, %v2042_v3, %v2001_v16  ;;  %v1933_v0 = vsel %vm314_vm0, %v1901_v40, %v1932_v5 }
 0x110   : > { %v2049_v56 = vperm.slane %v2043_v43, %v2687_v19  ;;  %v1980_v9 = vrot.slane %v1937_v20, 4  ;;  %v1941_v47 = vperm.slane %v1933_v0, %v2687_v19  ;;  %v2044_v15 = vrot.slane %v2001_v16, 4 }
 0x111   : > { %v1978_v22 = vrot.slane %v1961_v31, 4  ;;  %v2066_v36 = vrot.slane %v2037_v63, 4  ;;  %v2068_v30 = vrot.slane %v2025_v60, 4  ;;  %v1957_v1 = vsel %vm314_vm0, %v1925_v42, %v1956_v11 }
 0x112   : > { %v1981_v38 = vsel %vm314_vm0, %v1961_v31, %v1980_v9  ;;  %v2092_v62 = vrot.slane %v2049_v56, 4  ;;  %v1984_v52 = vrot.slane %v1941_v47, 4  ;;  %v1965_v13 = vperm.slane %v1957_v1, %v2687_v19 }
 0x113   : > { %v1979_v55 = vsel %vm314_vm0, %v1978_v22, %v1937_v20  ;;  %v2067_v40 = vsel %vm314_vm0, %v2066_v36, %v2025_v60  ;;  %2220 = vst [vmem:[%s2761_s16 + $0x390] sm:$0xff] %v1981_v38  ;;  %v2045_v21 = vsel %vm314_vm0, %v2013_v61, %v2044_v15  ;;  %v2069_v44 = vsel %vm314_vm0, %v2037_v63, %v2068_v30 }
 0x114   : > { %2218 = vst [vmem:[%s2761_s16 + $0x380] sm:$0xff] %v1979_v55  ;;  %v2073_v4 = vperm.slane %v2067_v40, %v2687_v19  ;;  %v2053_v59 = vperm.slane %v2045_v21, %v2687_v19  ;;  %v1885_v42 = vsel %vm314_vm0, %v3988_v23, %v1884_v12  ;;  %v1982_v26 = vrot.slane %v1965_v13, 4 }
 0x115   : > { %v2077_v16 = vperm.slane %v2069_v44, %v2687_v19  ;;  %v1985_v48 = vsel %vm314_vm0, %v1965_v13, %v1984_v52  ;;  %v1893_v61 = vperm.slane %v1885_v42, %v2664_v7  ;;  %v1897_v10 = vsel %vm314_vm0, %v4004_v39, %v1896_v2 }
 0x116   : > { %v2090_v50 = vrot.slane %v2073_v4, 4  ;;  %v2093_v34 = vsel %vm314_vm0, %v2073_v4, %v2092_v62  ;;  %2224 = vst [vmem:[%s2761_s16 + $0x3b0] sm:$0xff] %v1985_v48  ;;  %v2096_v41 = vrot.slane %v2053_v59, 4  ;;  %v1983_v23 = vsel %vm314_vm0, %v1982_v26, %v1941_v47 }
 0x117   : > { %2221 = vst [vmem:[%s2761_s16 + $0x398] sm:$0xff] %v2093_v34  ;;  %v2094_v12 = vrot.slane %v2077_v16, 4  ;;  %v1905_v45 = vperm.slane %v1897_v10, %v2664_v7  ;;  %v1909_v3 = vsel %vm314_vm0, %v4017_v24, %v1908_v54  ;;  %v1921_v2 = vsel %vm314_vm0, %v4020_v51, %v1920_v25 }
 0x118   : > { %v2091_v5 = vsel %vm314_vm0, %v2090_v50, %v2049_v56  ;;  %2222 = vst [vmem:[%s2761_s16 + $0x3a0] sm:$0xff] %v1983_v23  ;;  %v2097_v14 = vsel %vm314_vm0, %v2077_v16, %v2096_v41  ;;  %v1917_v39 = vperm.slane %v1909_v3, %v2664_v7  ;;  %v1929_v49 = vperm.slane %v1921_v2, %v2664_v7 }
 0x119   : > { %2219 = vst [vmem:[%s2761_s16 + $0x388] sm:$0xff] %v2091_v5  ;;  %v2095_v20 = vsel %vm314_vm0, %v2094_v12, %v2053_v59  ;;  %v1942_v6 = vrot.slane %v1905_v45, 4  ;;  %v1997_v24 = vsel %vm314_vm0, %v4033_v46, %v1996_v53  ;;  %v2009_v8 = vsel %vm314_vm0, %v4036_v28, %v2008_v33 }
 0x11a   : > { %2223 = vst [vmem:[%s2761_s16 + $0x3a8] sm:$0xff] %v2095_v20  ;;  %v2005_v54 = vperm.slane %v1997_v24, %v2664_v7  ;;  %v2021_v51 = vsel %vm314_vm0, %v4055_v17, %v2020_v27  ;;  %v2033_v32 = vsel %vm314_vm0, %v4073_v35, %v2032_v37  ;;  %v1966_v25 = vrot.slane %v1929_v49, 4 }
 0x11b   : > { %2225 = vst [vmem:[%s2761_s16 + $0x3b8] sm:$0xff] %v2097_v14  ;;  %v1943_v46 = vsel %vm314_vm0, %v1942_v6, %v1893_v61  ;;  %v2017_v18 = vperm.slane %v2009_v8, %v2664_v7  ;;  %v2029_v53 = vperm.slane %v2021_v51, %v2664_v7  ;;  %v2041_v29 = vperm.slane %v2033_v32, %v2664_v7 }
 0x11c   : > { %v1949_v28 = vperm.slane %v1943_v46, %v2687_v19  ;;  %v1944_v33 = vrot.slane %v1893_v61, 4  ;;  %v1968_v17 = vrot.slane %v1917_v39, 4  ;;  %v1967_v57 = vsel %vm314_vm0, %v1966_v25, %v1917_v39 }
 0x11d   : > { %v2054_v27 = vrot.slane %v2017_v18, 4  ;;  %v2056_v60 = vrot.slane %v2005_v54, 4  ;;  %v2080_v35 = vrot.slane %v2029_v53, 4  ;;  %v1973_v37 = vperm.slane %v1967_v57, %v2687_v19 }
 0x11e   : > { %v2078_v58 = vrot.slane %v2041_v29, 4  ;;  %v1988_v31 = vrot.slane %v1949_v28, 4  ;;  %v1945_v63 = vsel %vm314_vm0, %v1905_v45, %v1944_v33  ;;  %v1969_v7 = vsel %vm314_vm0, %v1929_v49, %v1968_v17 }
 0x11f   : > { %v2055_v43 = vsel %vm314_vm0, %v2054_v27, %v2005_v54  ;;  %v1953_v0 = vperm.slane %v1945_v63, %v2687_v19  ;;  %v2057_v56 = vsel %vm314_vm0, %v2017_v18, %v2056_v60  ;;  %v1986_v9 = vrot.slane %v1973_v37, 4 }
 0x120   : > { %v2061_v47 = vperm.slane %v2055_v43, %v2687_v19  ;;  %v2079_v11 = vsel %vm314_vm0, %v2078_v58, %v2029_v53  ;;  %v1989_v22 = vsel %vm314_vm0, %v1973_v37, %v1988_v31  ;;  %v1977_v15 = vperm.slane %v1969_v7, %v2687_v19 }
 0x121   : > { %v2085_v36 = vperm.slane %v2079_v11, %v2687_v19  ;;  %2228 = vst [vmem:[%s2761_s16 + $0x3d0] sm:$0xff] %v1989_v22  ;;  %v2065_v30 = vperm.slane %v2057_v56, %v2687_v19  ;;  %v2081_v38 = vsel %vm314_vm0, %v2041_v29, %v2080_v35  ;;  %v1987_v62 = vsel %vm314_vm0, %v1986_v9, %v1949_v28 }
 0x122   : > { %v2100_v1 = vrot.slane %v2061_v47, 4  ;;  %v2089_v52 = vperm.slane %v2081_v38, %v2687_v19  ;;  %v1992_v55 = vrot.slane %v1953_v0, 4  ;;  %2226 = vst [vmem:[%s2761_s16 + $0x3c0] sm:$0xff] %v1987_v62  ;;  %v1990_v13 = vrot.slane %v1977_v15, 4 }
 0x123   : > { %v2098_v40 = vrot.slane %v2085_v36, 4  ;;  %v2104_v21 = vrot.slane %v2065_v30, 4 }
 0x124   : > { %v2101_v4 = vsel %vm314_vm0, %v2085_v36, %v2100_v1  ;;  %v2102_v59 = vrot.slane %v2089_v52, 4  ;;  %v1991_v19 = vsel %vm314_vm0, %v1990_v13, %v1953_v0  ;;  %v1993_v26 = vsel %vm314_vm0, %v1977_v15, %v1992_v55 }
 0x125   : > { %v2099_v44 = vsel %vm314_vm0, %v2098_v40, %v2061_v47  ;;  %2229 = vst [vmem:[%s2761_s16 + $0x3d8] sm:$0xff] %v2101_v4  ;;  %v2105_v16 = vsel %vm314_vm0, %v2089_v52, %v2104_v21 }
 0x126   : > { %2227 = vst [vmem:[%s2761_s16 + $0x3c8] sm:$0xff] %v2099_v44  ;;  %v2103_v42 = vsel %vm314_vm0, %v2102_v59, %v2065_v30 }
 0x127   : > { %2230 = vst [vmem:[%s2761_s16 + $0x3e0] sm:$0xff] %v1991_v19 }
 0x128   : > { %2231 = vst [vmem:[%s2761_s16 + $0x3e8] sm:$0xff] %v2103_v42 }
 0x129   : > { %2232 = vst [vmem:[%s2761_s16 + $0x3f0] sm:$0xff] %v1993_v26 }
 0x12a   : > { %2233 = vst [vmem:[%s2761_s16 + $0x3f8] sm:$0xff] %v2105_v16 }
 0x12b   : > { %2497 = shalt.err (!%p2494_p10)
}
 0x12c   : > { %s2558_s4 = smov 128   ;;  %s2559_s5 = smov 8  }
 0x12d   : > { %2374 = dma.vmem_to_hbm [thread:$0]  (%p2621_p9), %s2254_s23, 16384, %s2256_s24, %s2235_s25, %s2558_s4, %s2558_s4, %s2559_s5  }
 0x12e PF: > { %p2385_p12 = scmp.ge.s32.totalorder %s2552_s11, 2  ;;  %s2270_s12 = sand.u32 1, %s2532_s6  }
 0x12f   : > { %s2271_s13 = scalar_lea.sflag [#allocation4], %s2270_s12 }
 0x130   : > { %p2381_p13 = pnand %p2385_p12, %p2628_p11 }
 0x132   : > { %p2382_p0 = pneg %p2381_p13 }
 0x134   : > { %2527 = dma.done.wait (%p2382_p0), %s2271_s13, 16384  }
 0x135   : > { %2529 = vsyncadd (%p2382_p0), %s2271_s13, 4294950912  ;;  %s17_s11 = sadd.s32 1, %s2552_s11   ;;  %s4243_s6 = smov %s2536_s7 }
 0x136   : > { %p14_p1 = scmp.ge.s32.totalorder %s17_s11, 6   ;;  %s4244_s7 = smov %s2540_s8 }
 0x137   : > { %s4245_s8 = smov %s2626_s20  ;;  %s4246_s9 = smov %s2548_s10 }
 0x138   : > { %s4247_s10 = smov %s4249_s14  ;;  %16 = sbr.rel (!%p14_p1) target bundleno = 6 (0x6), region = 69 }
 0x13d   :  { %2277 = vsyncpa [#allocation3], 1 }
 0x13e   :  { %2279 = vsyncpa [#allocation3 + $0x1], 1 }
 0x13f   :  { %2280 = vsyncpa [#allocation4], 1 }
 0x140   :  { %2282 = vsyncpa [#allocation4 + $0x1], 1 }

</bundles_post_ra>
